<compile_context>
chip_gen: v7x
topology: tpu7x:2x2x1
jax: 0.10.0
libtpu: 0.0.40
codegen_flags: <defaults>
</compile_context>

<pallas_src>
import jax
import jax.numpy as jnp
from jax.experimental import pallas as pl
from jax.experimental.pallas import tpu as pltpu


def _round_up(x, m):
    return ((x + m - 1) // m) * m


# ---------------------------------------------------------------------------
# Fused kernel: re-parameterized 3x3 conv + bias + SiLU on one row tile.
# Shared by the "resident image" path (x block = whole padded image, row window
# selected with program_id(1)) and the pre-tiled fallback path (grid[1] == 1).
# ---------------------------------------------------------------------------
def _repconv_kernel(x_ref, w_ref, b_ref, o_ref):
    # x_ref: (1, R, Wt+2, Cin)  with R = h_pad+2 (resident) or th+2 (fallback)
    # w_ref: (9, Cin, Cout)     b_ref: (1, Cout)    o_ref: (1, TH, Wt, Cout)
    th, w_t, cout = o_ref.shape[1], o_ref.shape[2], o_ref.shape[3]
    cin = x_ref.shape[3]
    row0 = pl.program_id(1) * th            # 0 in the fallback path (grid[1]==1)

    acc = jnp.zeros((th * w_t, cout), jnp.float32)
    for dy in range(3):
        # One VMEM load per row-offset; the 3 dx taps slice the loaded value.
        rows = x_ref[0, pl.ds(row0 + dy, th), :, :]        # (TH, Wt+2, Cin)
        for dx in range(3):
            win = rows[:, dx:dx + w_t, :].reshape(th * w_t, cin)
            acc = acc + jnp.dot(win, w_ref[3 * dy + dx],
                                preferred_element_type=jnp.float32)

    y = acc + b_ref[...]                    # folded bias (f32)
    y = y * jax.nn.sigmoid(y)               # SiLU / swish
    o_ref[0] = y.reshape(th, w_t, cout).astype(o_ref.dtype)


def repconv_apply(x_nhwc, w9, bias, *, tile_h=32,
                  max_resident_bytes=16 * 1024 * 1024):
    """Apply the re-parameterized RepConv (3x3, stride 1, pad 1) + SiLU."""
    N, H, W, Cin = x_nhwc.shape
    Cout = w9.shape[-1]
    LANE, SUB = 128, 8

    cin_p = _round_up(Cin, LANE)     # lane-dense loads / MXU-friendly K
    cout_p = _round_up(Cout, LANE)   # lane-dense (unmasked) output stores
    w_t = _round_up(W, SUB)          # keep the (TH, W) merge layout-preserving
    th = min(tile_h, H)
    T = pl.cdiv(H, th)
    h_pad = T * th

    if cin_p != Cin:
        x_nhwc = jnp.pad(x_nhwc, ((0, 0), (0, 0), (0, 0), (0, cin_p - Cin)))
        w9 = jnp.pad(w9, ((0, 0), (0, cin_p - Cin), (0, 0)))
    if cout_p != Cout:
        w9 = jnp.pad(w9, ((0, 0), (0, 0), (0, cout_p - Cout)))
        bias = jnp.pad(bias, ((0, cout_p - Cout),))
    bias2d = bias.reshape(1, cout_p).astype(jnp.float32)

    # Conv zero-padding (1 each side) + round H up to T*TH and W up to Wt.
    xp = jnp.pad(x_nhwc, ((0, 0),
                          (1, 1 + h_pad - H),
                          (1, 1 + w_t - W),
                          (0, 0)))                  # (N, h_pad+2, w_t+2, cin_p)

    itemsize = jnp.dtype(x_nhwc.dtype).itemsize
    resident_bytes = (h_pad + 2) * (w_t + 2) * cin_p * itemsize

    w_spec = pl.BlockSpec((9, cin_p, cout_p), lambda a, b: (0, 0, 0))
    b_spec = pl.BlockSpec((1, cout_p), lambda a, b: (0, 0))

    if resident_bytes <= max_resident_bytes:
        # Fast path: whole padded image resident in VMEM across the T row-tile
        # steps -> input DMA'd from HBM exactly once per batch element, no
        # extra HBM copy for halos.
        out = pl.pallas_call(
            _repconv_kernel,
            out_shape=jax.ShapeDtypeStruct((N, h_pad, w_t, cout_p),
                                           x_nhwc.dtype),
            grid=(N, T),
            in_specs=[
                pl.BlockSpec((1, h_pad + 2, w_t + 2, cin_p),
                             lambda n, t: (n, 0, 0, 0)),
                w_spec, b_spec,
            ],
            out_specs=pl.BlockSpec((1, th, w_t, cout_p),
                                   lambda n, t: (n, t, 0, 0)),
            compiler_params=pltpu.CompilerParams(
                dimension_semantics=("parallel", "arbitrary")),
        )(xp, w9, bias2d)
    else:
        # Fallback (large images): overlapped row tiles with a 2-row halo built
        # in the wrapper, keeping per-step VMEM small.
        xt = jnp.stack([xp[:, i * th:i * th + th + 2] for i in range(T)],
                       axis=1)
        xt = xt.reshape(N * T, th + 2, w_t + 2, cin_p)
        out = pl.pallas_call(
            _repconv_kernel,
            out_shape=jax.ShapeDtypeStruct((N * T, th, w_t, cout_p),
                                           x_nhwc.dtype),
            grid=(N * T, 1),
            in_specs=[
                pl.BlockSpec((1, th + 2, w_t + 2, cin_p),
                             lambda g, t: (g, 0, 0, 0)),
                w_spec, b_spec,
            ],
            out_specs=pl.BlockSpec((1, th, w_t, cout_p),
                                   lambda g, t: (g, 0, 0, 0)),
            compiler_params=pltpu.CompilerParams(
                dimension_semantics=("parallel", "arbitrary")),
        )(xt, w9, bias2d)
        out = out.reshape(N, h_pad, w_t, cout_p)

    return out[:, :H, :W, :Cout]


# ---------------------------------------------------------------------------
# Re-parameterization: fold BN (eval mode) + 1x1 + identity into one 3x3 conv.
# ---------------------------------------------------------------------------
def fold_repconv_params(p, eps=1e-5):
    c2, c1 = p["w_dense"].shape[:2]

    def affine(prm):
        g, b, m, v = prm
        s = g / jnp.sqrt(v + eps)
        return s, b - m * s

    s_d, b_d = affine(p["bn_dense"])
    s_1, b_1 = affine(p["bn_1x1"])

    # (c2, c1, 3, 3) -> (3, 3, c1, c2), scaled per output channel.
    w = jnp.transpose(p["w_dense"], (2, 3, 1, 0)) * s_d
    # 1x1 branch folds into the center tap.
    w = w.at[1, 1].add(jnp.transpose(p["w_1x1"][:, :, 0, 0]) * s_1)
    bias = b_d + b_1
    if p.get("bn_id") is not None:                   # identity BN (c1 == c2)
        s_i, b_i = affine(p["bn_id"])
        w = w.at[1, 1].add(jnp.eye(c1, dtype=w.dtype) * s_i)
        bias = bias + b_i
    return w.reshape(9, c1, c2), bias


def repconv_forward(x_nchw, params, *, tile_h=32,
                    max_resident_bytes=16 * 1024 * 1024):
    w9, bias = fold_repconv_params(params)
    x = jnp.transpose(x_nchw, (0, 2, 3, 1))          # NCHW -> NHWC
    y = repconv_apply(x, w9, bias, tile_h=tile_h,
                      max_resident_bytes=max_resident_bytes)
    return jnp.transpose(y, (0, 3, 1, 2))            # NHWC -> NCHW


# ---------------------------------------------------------------------------
# Deterministic synthetic parameters (inference-mode BN with running stats).
# ---------------------------------------------------------------------------
def make_repconv_params(key, c1, c2):
    ks = jax.random.split(key, 5)

    def bn_params(k, ch):
        kg, kb, km, kv = jax.random.split(k, 4)
        gamma = 1.0 + 0.1 * jax.random.normal(kg, (ch,), jnp.float32)
        beta = 0.1 * jax.random.normal(kb, (ch,), jnp.float32)
        mean = 0.1 * jax.random.normal(km, (ch,), jnp.float32)
        var = jnp.abs(1.0 + 0.1 * jax.random.normal(kv, (ch,), jnp.float32))
        return (gamma, beta, mean, var)

    return {
        "w_dense": 0.1 * jax.random.normal(ks[0], (c2, c1, 3, 3), jnp.float32),
        "w_1x1": 0.1 * jax.random.normal(ks[1], (c2, c1, 1, 1), jnp.float32),
        "bn_dense": bn_params(ks[2], c2),
        "bn_1x1": bn_params(ks[3], c2),
        "bn_id": bn_params(ks[4], c1) if c1 == c2 else None,
    }


# ---------------------------------------------------------------------------
# Pure-JAX reference that follows the PyTorch module structure branch-by-branch.
# ---------------------------------------------------------------------------
def repconv_reference(x_nchw, p, eps=1e-5):
    def bn(y, prm):
        g, b, m, v = prm
        g, b = g[None, :, None, None], b[None, :, None, None]
        m, v = m[None, :, None, None], v[None, :, None, None]
        return (y - m) * (g / jnp.sqrt(v + eps)) + b

    dense = jax.lax.conv_general_dilated(
        x_nchw, p["w_dense"], window_strides=(1, 1), padding=((1, 1), (1, 1)),
        dimension_numbers=("NCHW", "OIHW", "NCHW"))
    dense = bn(dense, p["bn_dense"])
    one = jax.lax.conv_general_dilated(
        x_nchw, p["w_1x1"], window_strides=(1, 1), padding=((0, 0), (0, 0)),
        dimension_numbers=("NCHW", "OIHW", "NCHW"))
    one = bn(one, p["bn_1x1"])
    ident = bn(x_nchw, p["bn_id"]) if p.get("bn_id") is not None else 0.0
    y = dense + one + ident
    return y * jax.nn.sigmoid(y)


if __name__ == "__main__":
    key = jax.random.PRNGKey(0)
    k_a, k_b, k_pa, k_pb = jax.random.split(key, 4)

    # Config A: c1 == c2 -> identity BN branch active (batch=2, c=8, 16x16).
    N, c1, c2, H, W = 2, 8, 8, 16, 16
    x_a = jax.random.normal(k_a, (N, c1, H, W), jnp.float32)
    p_a = make_repconv_params(k_pa, c1, c2)
    out_a = jax.block_until_ready(repconv_forward(x_a, p_a))
    ref_a = jax.block_until_ready(repconv_reference(x_a, p_a))
    assert out_a.shape == (N, c2, H, W), out_a.shape
    assert jnp.allclose(out_a, ref_a, atol=1e-4, rtol=1e-4), \
        float(jnp.max(jnp.abs(out_a - ref_a)))

    # Config B: c1 != c2 (no identity), odd spatial size, exercises row tiling.
    N2, c1b, c2b, H2, W2 = 1, 4, 16, 20, 20
    x_b = jax.random.normal(k_b, (N2, c1b, H2, W2), jnp.float32)
    p_b = make_repconv_params(k_pb, c1b, c2b)
    out_b = jax.block_until_ready(repconv_forward(x_b, p_b, tile_h=8))
    ref_b = jax.block_until_ready(repconv_reference(x_b, p_b))
    assert out_b.shape == (N2, c2b, H2, W2), out_b.shape
    assert jnp.allclose(out_b, ref_b, atol=1e-4, rtol=1e-4), \
        float(jnp.max(jnp.abs(out_b - ref_b)))

    # Config B again, forcing the VMEM-bounded overlapped-tile fallback path.
    out_c = jax.block_until_ready(
        repconv_forward(x_b, p_b, tile_h=8, max_resident_bytes=0))
    assert jnp.allclose(out_c, ref_b, atol=1e-4, rtol=1e-4), \
        float(jnp.max(jnp.abs(out_c - ref_b)))

    print("KERNEL_OK")
</pallas_src>

<mosaic_0001>
module attributes {stable_mosaic.version = 11 : i64} {
  func.func @_repconv_kernel(%arg0: i32, %arg1: i32, %arg2: memref<1x18x18x128xf32, #tpu.memory_space<vmem>>, %arg3: memref<9x128x128xf32, #tpu.memory_space<vmem>>, %arg4: memref<1x128xf32, #tpu.memory_space<vmem>>, %arg5: memref<1x16x16x128xf32, #tpu.memory_space<vmem>>) attributes {dimension_semantics = [#tpu.dimension_semantics<parallel>, #tpu.dimension_semantics<arbitrary>], iteration_bounds = array<i64: 2, 1>, scalar_prefetch = 0 : i64, scratch_operands = 0 : i64, tpu.core_type = #tpu.core_type<tc>, window_params = [{transform_indices = @transform_0, window_bounds = array<i64: 1, 18, 18, 128>}, {pipeline_mode = #tpu.pipeline_mode<synchronous>, transform_indices = @transform_1, window_bounds = array<i64: 9, 128, 128>}, {pipeline_mode = #tpu.pipeline_mode<synchronous>, transform_indices = @transform_2, window_bounds = array<i64: 1, 128>}, {transform_indices = @transform_3, window_bounds = array<i64: 1, 16, 16, 128>}]} {
    %c16_i32 = arith.constant 16 : i32
    %0 = arith.muli %arg1, %c16_i32 : i32
    %cst = arith.constant 0.000000e+00 : f32
    %1 = vector.broadcast %cst : f32 to vector<256x128xf32>
    %c0_i32 = arith.constant 0 : i32
    %2 = arith.addi %0, %c0_i32 : i32
    %c0 = arith.constant 0 : index
    %3 = arith.index_cast %2 : i32 to index
    %c0_0 = arith.constant 0 : index
    %c0_1 = arith.constant 0 : index
    %4 = vector.load %arg2[%c0, %3, %c0_0, %c0_1] : memref<1x18x18x128xf32, #tpu.memory_space<vmem>>, vector<1x16x18x128xf32>
    %5 = vector.shape_cast %4 : vector<1x16x18x128xf32> to vector<16x18x128xf32>
    %6 = vector.extract_strided_slice %5 {offsets = [0, 0, 0], sizes = [16, 16, 128], strides = [1, 1, 1]} : vector<16x18x128xf32> to vector<16x16x128xf32>
    %7 = vector.shape_cast %6 : vector<16x16x128xf32> to vector<256x128xf32>
    %c0_2 = arith.constant 0 : index
    %c0_3 = arith.constant 0 : index
    %c0_4 = arith.constant 0 : index
    %8 = vector.load %arg3[%c0_2, %c0_3, %c0_4] : memref<9x128x128xf32, #tpu.memory_space<vmem>>, vector<1x128x128xf32>
    %9 = vector.shape_cast %8 : vector<1x128x128xf32> to vector<128x128xf32>
    %cst_5 = arith.constant dense<0.000000e+00> : vector<256x128xf32>
    %10 = tpu.matmul %7, %9, %cst_5 {dimension_numbers = #tpu.dot_dimension_numbers<[1], [0], [0], [1], [0, 0, 1, 1], [], []>} : vector<256x128xf32>, vector<128x128xf32>, vector<256x128xf32> -> vector<256x128xf32>
    %11 = arith.addf %1, %10 : vector<256x128xf32>
    %12 = vector.extract_strided_slice %5 {offsets = [0, 1, 0], sizes = [16, 16, 128], strides = [1, 1, 1]} : vector<16x18x128xf32> to vector<16x16x128xf32>
    %13 = vector.shape_cast %12 : vector<16x16x128xf32> to vector<256x128xf32>
    %c1 = arith.constant 1 : index
    %c0_6 = arith.constant 0 : index
    %c0_7 = arith.constant 0 : index
    %14 = vector.load %arg3[%c1, %c0_6, %c0_7] : memref<9x128x128xf32, #tpu.memory_space<vmem>>, vector<1x128x128xf32>
    %15 = vector.shape_cast %14 : vector<1x128x128xf32> to vector<128x128xf32>
    %cst_8 = arith.constant dense<0.000000e+00> : vector<256x128xf32>
    %16 = tpu.matmul %13, %15, %cst_8 {dimension_numbers = #tpu.dot_dimension_numbers<[1], [0], [0], [1], [0, 0, 1, 1], [], []>} : vector<256x128xf32>, vector<128x128xf32>, vector<256x128xf32> -> vector<256x128xf32>
    %17 = arith.addf %11, %16 : vector<256x128xf32>
    %18 = vector.extract_strided_slice %5 {offsets = [0, 2, 0], sizes = [16, 16, 128], strides = [1, 1, 1]} : vector<16x18x128xf32> to vector<16x16x128xf32>
    %19 = vector.shape_cast %18 : vector<16x16x128xf32> to vector<256x128xf32>
    %c2 = arith.constant 2 : index
    %c0_9 = arith.constant 0 : index
    %c0_10 = arith.constant 0 : index
    %20 = vector.load %arg3[%c2, %c0_9, %c0_10] : memref<9x128x128xf32, #tpu.memory_space<vmem>>, vector<1x128x128xf32>
    %21 = vector.shape_cast %20 : vector<1x128x128xf32> to vector<128x128xf32>
    %cst_11 = arith.constant dense<0.000000e+00> : vector<256x128xf32>
    %22 = tpu.matmul %19, %21, %cst_11 {dimension_numbers = #tpu.dot_dimension_numbers<[1], [0], [0], [1], [0, 0, 1, 1], [], []>} : vector<256x128xf32>, vector<128x128xf32>, vector<256x128xf32> -> vector<256x128xf32>
    %23 = arith.addf %17, %22 : vector<256x128xf32>
    %c1_i32 = arith.constant 1 : i32
    %24 = arith.addi %0, %c1_i32 : i32
    %c0_12 = arith.constant 0 : index
    %25 = arith.index_cast %24 : i32 to index
    %c0_13 = arith.constant 0 : index
    %c0_14 = arith.constant 0 : index
    %26 = vector.load %arg2[%c0_12, %25, %c0_13, %c0_14] : memref<1x18x18x128xf32, #tpu.memory_space<vmem>>, vector<1x16x18x128xf32>
    %27 = vector.shape_cast %26 : vector<1x16x18x128xf32> to vector<16x18x128xf32>
    %28 = vector.extract_strided_slice %27 {offsets = [0, 0, 0], sizes = [16, 16, 128], strides = [1, 1, 1]} : vector<16x18x128xf32> to vector<16x16x128xf32>
    %29 = vector.shape_cast %28 : vector<16x16x128xf32> to vector<256x128xf32>
    %c3 = arith.constant 3 : index
    %c0_15 = arith.constant 0 : index
    %c0_16 = arith.constant 0 : index
    %30 = vector.load %arg3[%c3, %c0_15, %c0_16] : memref<9x128x128xf32, #tpu.memory_space<vmem>>, vector<1x128x128xf32>
    %31 = vector.shape_cast %30 : vector<1x128x128xf32> to vector<128x128xf32>
    %cst_17 = arith.constant dense<0.000000e+00> : vector<256x128xf32>
    %32 = tpu.matmul %29, %31, %cst_17 {dimension_numbers = #tpu.dot_dimension_numbers<[1], [0], [0], [1], [0, 0, 1, 1], [], []>} : vector<256x128xf32>, vector<128x128xf32>, vector<256x128xf32> -> vector<256x128xf32>
    %33 = arith.addf %23, %32 : vector<256x128xf32>
    %34 = vector.extract_strided_slice %27 {offsets = [0, 1, 0], sizes = [16, 16, 128], strides = [1, 1, 1]} : vector<16x18x128xf32> to vector<16x16x128xf32>
    %35 = vector.shape_cast %34 : vector<16x16x128xf32> to vector<256x128xf32>
    %c4 = arith.constant 4 : index
    %c0_18 = arith.constant 0 : index
    %c0_19 = arith.constant 0 : index
    %36 = vector.load %arg3[%c4, %c0_18, %c0_19] : memref<9x128x128xf32, #tpu.memory_space<vmem>>, vector<1x128x128xf32>
    %37 = vector.shape_cast %36 : vector<1x128x128xf32> to vector<128x128xf32>
    %cst_20 = arith.constant dense<0.000000e+00> : vector<256x128xf32>
    %38 = tpu.matmul %35, %37, %cst_20 {dimension_numbers = #tpu.dot_dimension_numbers<[1], [0], [0], [1], [0, 0, 1, 1], [], []>} : vector<256x128xf32>, vector<128x128xf32>, vector<256x128xf32> -> vector<256x128xf32>
    %39 = arith.addf %33, %38 : vector<256x128xf32>
    %40 = vector.extract_strided_slice %27 {offsets = [0, 2, 0], sizes = [16, 16, 128], strides = [1, 1, 1]} : vector<16x18x128xf32> to vector<16x16x128xf32>
    %41 = vector.shape_cast %40 : vector<16x16x128xf32> to vector<256x128xf32>
    %c5 = arith.constant 5 : index
    %c0_21 = arith.constant 0 : index
    %c0_22 = arith.constant 0 : index
    %42 = vector.load %arg3[%c5, %c0_21, %c0_22] : memref<9x128x128xf32, #tpu.memory_space<vmem>>, vector<1x128x128xf32>
    %43 = vector.shape_cast %42 : vector<1x128x128xf32> to vector<128x128xf32>
    %cst_23 = arith.constant dense<0.000000e+00> : vector<256x128xf32>
    %44 = tpu.matmul %41, %43, %cst_23 {dimension_numbers = #tpu.dot_dimension_numbers<[1], [0], [0], [1], [0, 0, 1, 1], [], []>} : vector<256x128xf32>, vector<128x128xf32>, vector<256x128xf32> -> vector<256x128xf32>
    %45 = arith.addf %39, %44 : vector<256x128xf32>
    %c2_i32 = arith.constant 2 : i32
    %46 = arith.addi %0, %c2_i32 : i32
    %c0_24 = arith.constant 0 : index
    %47 = arith.index_cast %46 : i32 to index
    %c0_25 = arith.constant 0 : index
    %c0_26 = arith.constant 0 : index
    %48 = vector.load %arg2[%c0_24, %47, %c0_25, %c0_26] : memref<1x18x18x128xf32, #tpu.memory_space<vmem>>, vector<1x16x18x128xf32>
    %49 = vector.shape_cast %48 : vector<1x16x18x128xf32> to vector<16x18x128xf32>
    %50 = vector.extract_strided_slice %49 {offsets = [0, 0, 0], sizes = [16, 16, 128], strides = [1, 1, 1]} : vector<16x18x128xf32> to vector<16x16x128xf32>
    %51 = vector.shape_cast %50 : vector<16x16x128xf32> to vector<256x128xf32>
    %c6 = arith.constant 6 : index
    %c0_27 = arith.constant 0 : index
    %c0_28 = arith.constant 0 : index
    %52 = vector.load %arg3[%c6, %c0_27, %c0_28] : memref<9x128x128xf32, #tpu.memory_space<vmem>>, vector<1x128x128xf32>
    %53 = vector.shape_cast %52 : vector<1x128x128xf32> to vector<128x128xf32>
    %cst_29 = arith.constant dense<0.000000e+00> : vector<256x128xf32>
    %54 = tpu.matmul %51, %53, %cst_29 {dimension_numbers = #tpu.dot_dimension_numbers<[1], [0], [0], [1], [0, 0, 1, 1], [], []>} : vector<256x128xf32>, vector<128x128xf32>, vector<256x128xf32> -> vector<256x128xf32>
    %55 = arith.addf %45, %54 : vector<256x128xf32>
    %56 = vector.extract_strided_slice %49 {offsets = [0, 1, 0], sizes = [16, 16, 128], strides = [1, 1, 1]} : vector<16x18x128xf32> to vector<16x16x128xf32>
    %57 = vector.shape_cast %56 : vector<16x16x128xf32> to vector<256x128xf32>
    %c7 = arith.constant 7 : index
    %c0_30 = arith.constant 0 : index
    %c0_31 = arith.constant 0 : index
    %58 = vector.load %arg3[%c7, %c0_30, %c0_31] : memref<9x128x128xf32, #tpu.memory_space<vmem>>, vector<1x128x128xf32>
    %59 = vector.shape_cast %58 : vector<1x128x128xf32> to vector<128x128xf32>
    %cst_32 = arith.constant dense<0.000000e+00> : vector<256x128xf32>
    %60 = tpu.matmul %57, %59, %cst_32 {dimension_numbers = #tpu.dot_dimension_numbers<[1], [0], [0], [1], [0, 0, 1, 1], [], []>} : vector<256x128xf32>, vector<128x128xf32>, vector<256x128xf32> -> vector<256x128xf32>
    %61 = arith.addf %55, %60 : vector<256x128xf32>
    %62 = vector.extract_strided_slice %49 {offsets = [0, 2, 0], sizes = [16, 16, 128], strides = [1, 1, 1]} : vector<16x18x128xf32> to vector<16x16x128xf32>
    %63 = vector.shape_cast %62 : vector<16x16x128xf32> to vector<256x128xf32>
    %c8 = arith.constant 8 : index
    %c0_33 = arith.constant 0 : index
    %c0_34 = arith.constant 0 : index
    %64 = vector.load %arg3[%c8, %c0_33, %c0_34] : memref<9x128x128xf32, #tpu.memory_space<vmem>>, vector<1x128x128xf32>
    %65 = vector.shape_cast %64 : vector<1x128x128xf32> to vector<128x128xf32>
    %cst_35 = arith.constant dense<0.000000e+00> : vector<256x128xf32>
    %66 = tpu.matmul %63, %65, %cst_35 {dimension_numbers = #tpu.dot_dimension_numbers<[1], [0], [0], [1], [0, 0, 1, 1], [], []>} : vector<256x128xf32>, vector<128x128xf32>, vector<256x128xf32> -> vector<256x128xf32>
    %67 = arith.addf %61, %66 : vector<256x128xf32>
    %c0_36 = arith.constant 0 : index
    %c0_37 = arith.constant 0 : index
    %68 = vector.load %arg4[%c0_36, %c0_37] : memref<1x128xf32, #tpu.memory_space<vmem>>, vector<1x128xf32>
    %69 = vector.broadcast %68 : vector<1x128xf32> to vector<256x128xf32>
    %70 = arith.addf %67, %69 : vector<256x128xf32>
    %71 = arith.negf %70 : vector<256x128xf32>
    %72 = math.exp %71 : vector<256x128xf32>
    %cst_38 = arith.constant 1.000000e+00 : f32
    %73 = vector.broadcast %cst_38 : f32 to vector<256x128xf32>
    %74 = arith.addf %73, %72 : vector<256x128xf32>
    %75 = arith.divf %73, %74 : vector<256x128xf32>
    %76 = arith.mulf %70, %75 : vector<256x128xf32>
    %77 = vector.shape_cast %76 : vector<256x128xf32> to vector<16x16x128xf32>
    %c0_39 = arith.constant 0 : index
    %c0_40 = arith.constant 0 : index
    %c0_41 = arith.constant 0 : index
    %c0_42 = arith.constant 0 : index
    %78 = vector.load %arg5[%c0_39, %c0_40, %c0_41, %c0_42] : memref<1x16x16x128xf32, #tpu.memory_space<vmem>>, vector<1x16x16x128xf32>
    %79 = vector.shape_cast %78 : vector<1x16x16x128xf32> to vector<16x16x128xf32>
    %80 = vector.shape_cast %77 : vector<16x16x128xf32> to vector<1x16x16x128xf32>
    tpu.vector_store %arg5[%c0_39, %c0_40, %c0_41, %c0_42], %80 {strides = array<i32>} : memref<1x16x16x128xf32, #tpu.memory_space<vmem>>, vector<1x16x16x128xf32>,
    return
  }
  func.func @transform_0(%arg0: i32, %arg1: i32) -> (i32, i32, i32, i32) {
    %c0_i32 = arith.constant 0 : i32
    %c0_i32_0 = arith.constant 0 : i32
    %c0_i32_1 = arith.constant 0 : i32
    %c0_i32_2 = arith.constant 0 : i32
    return %arg0, %c0_i32, %c0_i32_0, %c0_i32_1 : i32, i32, i32, i32
  }
  func.func @transform_1(%arg0: i32, %arg1: i32) -> (i32, i32, i32) {
    %c0_i32 = arith.constant 0 : i32
    %c0_i32_0 = arith.constant 0 : i32
    %c0_i32_1 = arith.constant 0 : i32
    %c0_i32_2 = arith.constant 0 : i32
    return %c0_i32, %c0_i32_0, %c0_i32_1 : i32, i32, i32
  }
  func.func @transform_2(%arg0: i32, %arg1: i32) -> (i32, i32) {
    %c0_i32 = arith.constant 0 : i32
    %c0_i32_0 = arith.constant 0 : i32
    %c0_i32_1 = arith.constant 0 : i32
    return %c0_i32, %c0_i32_0 : i32, i32
  }
  func.func @transform_3(%arg0: i32, %arg1: i32) -> (i32, i32, i32, i32) {
    %c0_i32 = arith.constant 0 : i32
    %c0_i32_0 = arith.constant 0 : i32
    %c0_i32_1 = arith.constant 0 : i32
    return %arg0, %arg1, %c0_i32, %c0_i32_0 : i32, i32, i32, i32
  }
}

</mosaic_0001>

<bundles_post_ra>
// kernel: tpu_custom_call.1
= control target key start
LH: loop header
LB: loop body
LE: loop exit
PB: predicated region body
PF: predicated region fallthrough
CT: control target
= control target key end

     0   :  { %8 = vsyncpa [#allocation3], 0  ;;  %s8108_s0 = inlined_call_operand.vmem [shape: f32[2,18,18,128], index: 0, kind: input, shape index: {}]   ;;  %s8109_s1 = inlined_call_operand.vmem [shape: f32[9,128,128], index: 1, kind: input, shape index: {}]   ;;  %s8110_s2 = inlined_call_operand.vmem [shape: f32[1,128], index: 2, kind: input, shape index: {}]   ;;  %s8111_s3 = inlined_call_operand.hbm [shape: f32[2,16,16,128], index: 3, kind: output, shape index: {}]  }
   0x1   :  { %10 = vsyncpa [#allocation3 + $0x1], 0  ;;  %s6267_s12 = smov 0   ;;  %s6269_s13 = smov 0  }
   0x2   :  { %s6271_s14 = smov 0   ;;  %s6273_s15 = smov 0  }
   0x3   :  { %s6275_s16 = smov 0   ;;  %s6277_s17 = smov 0  }
   0x4 LB: > { %s3951_s18 = sadd.s32 4294967295, %s6242_s17   ;;  %s3952_s19 = sadd.s32 4294967294, %s6242_s17   ;;  %s6242_s17 = sphi %s6277_s17, %s16_s17   ;;  %s6238_s16 = sphi %s6275_s16, %s8302_s16   ;;  %s6234_s15 = sphi %s6273_s15, %s8301_s15   ;;  %s6230_s14 = sphi %s6271_s14, %s8300_s14   ;;  %s6226_s13 = sphi %s6269_s13, %s8299_s13   ;;  %s6222_s12 = sphi %s6267_s12, %s8298_s12  }
   0x5   : > { %s28_s20 = sadd.s32 1, %s6238_s16  ;;  %s105_s21 = sadd.s32 1, %s6230_s14 }
   0x6   : > { %p30_p0 = scmp.ge.s32.totalorder %s28_s20, 2  ;;  %p115_p1 = scmp.ne.s32.totalorder %s6230_s14, %s6226_s13 }
   0x7   : > { %p116_p2 = scmp.eq.s32.totalorder %s3951_s18, 1  ;;  %p121_p3 = scmp.ne.s32.totalorder %s6226_s13, %s6222_s12 }
   0x8   : > { %s8304_s20 = smov (%p30_p0, %s28_s20), 0  ;;  %p122_p5 = scmp.eq.s32.totalorder %s3952_s19, 1 }
   0x9   : > { %p6307_p4 = por %p116_p2, %p115_p1  ;;  %s100_s23 = ssub.s32 %s6238_s16, %s8304_s20 }
   0xa   : > { %p3955_p6 = scmp.ge.s32.totalorder %s6242_s17, 1  ;;  %p103_p7 = scmp.eq.s32.totalorder %s100_s23, 0 }
   0xb   : > { %p6314_p8 = por %p122_p5, %p121_p3  ;;  %p154_p9 = scmp.lt.s32.totalorder %s6242_s17, 3 }
   0xc   : > { %s6320_s25 = scalar_select %p103_p7, %s6230_s14, %s105_s21  }
   0xd   : > { %p155_p10 = pnand %p3955_p6, %p154_p9 }
   0xf   : > { %158 = sbr.rel (%p155_p10) target bundleno = 606 (0x25e), region = 32 }
  0x16   : > { %v3958_v0 = vld [vmem:[%s8109_s1 + $0x80] sm:$0xff]  ;;  %v3959_v1 = vld [vmem:[%s8109_s1 + $0x88] sm:$0xff]  ;;  %p178_p11 = scmp.lt.s32.totalorder %s6234_s15, 1  ;;  %v3960_v5 = vld [vmem:[%s8109_s1 + $0x90] sm:$0xff]  ;;  %vm299_vm0 = vcmask 1046528   ;;  %vm879_vm1 = vcmask 1045504  }
  0x17   : > { %v4054_v2 = vld [vmem:[%s8109_s1 + $0x200] sm:$0xff]  ;;  %v5373_v3 = vpack.c.bf16 %v3959_v1, %v3958_v0  ;;  %v4055_v4 = vld [vmem:[%s8109_s1 + $0x208] sm:$0xff]  ;;  %v3961_v6 = vld [vmem:[%s8109_s1 + $0x98] sm:$0xff]  ;;  %s175_s30 = sand.u32 1, %s6226_s13   ;;  %s4220_s6 = sshll.u32 %s6234_s15, 12 }
  0x18   : > { %v6341_v7 = vpack.c.bf16 %v4055_v4, %v4054_v2  ;;  %v5377_v8 = vpack.c.bf16 %v3961_v6, %v3960_v5  ;;  %v4056_v9 = vld [vmem:[%s8109_s1 + $0x210] sm:$0xff]  ;;  %v4057_v10 = vld [vmem:[%s8109_s1 + $0x218] sm:$0xff]  ;;  %v3962_v11 = vld [vmem:[%s8109_s1 + $0xa0] sm:$0xff]  ;;  %s179_s27 = scalar_select %p178_p11, %s6234_s15, 1 }
  0x19   : > { %5374 = vmatprep.subr.bf16.mxu1 %v5373_v3  ;;  %v6353_v12 = vpack.c.bf16 %v4057_v10, %v4056_v9  ;;  %v3963_v13 = vld [vmem:[%s8109_s1 + $0xa8] sm:$0xff]  ;;  %v4058_v14 = vld [vmem:[%s8109_s1 + $0x220] sm:$0xff]  ;;  %v3964_v18 = vld [vmem:[%s8109_s1 + $0xb0] sm:$0xff]  ;;  %s3956_s4 = sshll.u32 %s175_s30, 8  ;;  %s8054_s10 = scalar_lea.hbm %s8111_s3, %s4220_s6 }
  0x1a   : > { %8187 = vst [vmem:[#allocation5_spill] sm:$0xff] %v6341_v7  ;;  %v4059_v15 = vld [vmem:[%s8109_s1 + $0x228] sm:$0xff]  ;;  %5502 = vmatprep.subr.bf16.mxu0 %v6341_v7  ;;  %5376 = vmatpush3.bf16.msra.mxu1 %v5373_v3  ;;  %s5933_s7 = smul.u32 432, %s179_s27  ;;  %v5381_v16 = vpack.c.bf16 %v3963_v13, %v3962_v11  ;;  %v3965_v19 = vld [vmem:[%s8109_s1 + $0xb8] sm:$0xff]  ;;  %v4060_v20 = vld [vmem:[%s8109_s1 + $0x230] sm:$0xff]  ;;  %s7921_s5 = scalar_lea.vmem [#allocation2], %s3956_s4 }
  0x1b   : > { %8188 = vst [vmem:[#allocation6_spill] sm:$0xff] %v6353_v12  ;;  %5504 = vmatpush3.bf16.msra.mxu0 %v6341_v7  ;;  %5378 = vmatprep.subr.bf16.mxu1 %v5377_v8  ;;  %v6367_v17 = vpack.c.bf16 %v4059_v15, %v4058_v14  ;;  %v4061_v21 = vld [vmem:[%s8109_s1 + $0x238] sm:$0xff]  ;;  %v5385_v22 = vpack.c.bf16 %v3965_v19, %v3964_v18  ;;  %v3966_v23 = vld [vmem:[%s8109_s1 + $0xc0] sm:$0xff]  ;;  %v3967_v24 = vld [vmem:[%s8109_s1 + $0xc8] sm:$0xff]  ;;  %s8062_s15 = scalar_lea.sflag [#allocation3], %s175_s30  ;;  %s6244_s18 = smov [#allocation2]  }
  0x1c   : > { %5506 = vmatprep.subr.bf16.mxu0 %v6353_v12  ;;  %s6384_s28 = scalar_lea.vmem %s8108_s0, %s5933_s7  ;;  %v6394_v25 = vpack.c.bf16 %v4061_v21, %v4060_v20  ;;  %v4062_v26 = vld [vmem:[%s8109_s1 + $0x240] sm:$0xff]  ;;  %v4063_v27 = vld [vmem:[%s8109_s1 + $0x248] sm:$0xff]  ;;  %v5389_v36 = vpack.c.bf16 %v3967_v24, %v3966_v23  ;;  %v3968_v38 = vld [vmem:[%s8109_s1 + $0xd0] sm:$0xff]  ;;  %s3868_s7 = sshll.u32 %s7921_s5, 4  ;;  %s8056_s7 = int_to_ptr.vmem [resolvable:$true] %s3868_s7 }
  0x1d   : > { %8189 = vst [vmem:[#allocation7_spill] sm:$0xff] %v6367_v17  ;;  %v6403_v28 = vld [vmem:[%s6384_s28] sm:$0xff]  ;;  %v6406_v29 = vld [vmem:[%s6384_s28 + $0x8] sm:$0xff]  ;;  %v6410_v31 = vld [vmem:[%s6384_s28 + $0x18] sm:$0xff]  ;;  %v6422_v37 = vpack.c.bf16 %v4063_v27, %v4062_v26  ;;  %s6164_s11 = scalar_lea.vmem %s8056_s7, 4096  ;;  %s6168_s19 = sshll.u32 %s6244_s18, 4  ;;  %s6169_s19 = int_to_ptr.vmem [resolvable:$false] %s6168_s19 }
  0x1e   : > { %5380 = vmatpush3.bf16.msra.mxu1 %v5377_v8  ;;  %8190 = vst [vmem:[#allocation8_spill] sm:$0xff] %v6394_v25  ;;  %v300_v30 = vrot.slane %v6403_v28, 1  ;;  %v6413_v32 = vld [vmem:[%s6384_s28 + $0x20] sm:$0xff]  ;;  %v301_v33 = vrot.slane %v6406_v29, 1  ;;  %v1639_v34 = vrot.slane %v6410_v31, 1  ;;  %v3969_v39 = vld [vmem:[%s8109_s1 + $0xd8] sm:$0xff]  ;;  %p6165_p12 = scmp.ne.s32.totalorder %s8056_s7, %s6164_s11  ;;  %p6171_p1 = scmp.lt.s32.totalorder %s8056_s7, %s6169_s19 }
  0x1f   : > { %5508 = vmatpush3.bf16.msra.mxu0 %v6353_v12  ;;  %5382 = vmatprep.subr.bf16.mxu1 %v5381_v16  ;;  %v6418_v35 = vrot.slane %v6413_v32, 1  ;;  %8191 = vst [vmem:[#allocation9_spill] sm:$0xff] %v6422_v37  ;;  %v4064_v42 = vld [vmem:[%s8109_s1 + $0x250] sm:$0xff]  ;;  %v4065_v43 = vld [vmem:[%s8109_s1 + $0x258] sm:$0xff]  ;;  %v5393_v44 = vpack.c.bf16 %v3969_v39, %v3968_v38  ;;  %v3970_v46 = vld [vmem:[%s8109_s1 + $0xe0] sm:$0xff]  ;;  %s6170_s21 = scalar_lea.vmem %s6169_s19, 8192 }
  0x20   : > { %5510 = vmatprep.subr.bf16.mxu0 %v6367_v17  ;;  %v302_v40 = vsel %vm299_vm0, %v300_v30, %v301_v33  ;;  %v6446_v45 = vpack.c.bf16 %v4065_v43, %v4064_v42  ;;  %v3971_v47 = vld [vmem:[%s8109_s1 + $0xe8] sm:$0xff]  ;;  %v4066_v48 = vld [vmem:[%s8109_s1 + $0x260] sm:$0xff]  ;;  %v3972_v52 = vld [vmem:[%s8109_s1 + $0xf0] sm:$0xff]  ;;  %p6166_p13 = pnand %p6165_p12, %p6307_p4  ;;  %p6172_p2 = scmp.lt.s32.totalorder %s6170_s21, %s6164_s11 }
  0x21   : > { %v6435_v41 = vsel %vm299_vm0, %v1639_v34, %v6418_v35  ;;  %4685 = vmatprep.mubr.f32.mxu1 %v302_v40  ;;  %v4067_v49 = vld [vmem:[%s8109_s1 + $0x268] sm:$0xff]  ;;  %v5397_v50 = vpack.c.bf16 %v3971_v47, %v3970_v46  ;;  %v3973_v53 = vld [vmem:[%s8109_s1 + $0xf8] sm:$0xff]  ;;  %v4068_v54 = vld [vmem:[%s8109_s1 + $0x270] sm:$0xff] }
  0x22   : > { %5384 = vmatpush3.bf16.msra.mxu1 %v5381_v16  ;;  %5005 = vmatprep.mubr.f32.mxu0 %v6435_v41  ;;  %8192 = vst [vmem:[#allocation10_spill] sm:$0xff] %v6446_v45  ;;  %v6462_v51 = vpack.c.bf16 %v4067_v49, %v4066_v48  ;;  %v4069_v55 = vld [vmem:[%s8109_s1 + $0x278] sm:$0xff]  ;;  %v5401_v56 = vpack.c.bf16 %v3973_v53, %v3972_v52  ;;  %v189_v57 = vld [vmem:[%s6384_s28 + $0x10] sm:$0x3]  ;;  %v235_v59 = vld [vmem:[%s8109_s1] sm:$0xff]  ;;  %p6167_p0 = pneg %p6166_p13  ;;  %p6173_p3 = por %p6172_p2, %p6171_p1 }
  0x23   : > { %5512 = vmatpush3.bf16.msra.mxu0 %v6367_v17  ;;  %5386 = vmatprep.subr.bf16.mxu1 %v5385_v22  ;;  %v6479_v58 = vpack.c.bf16 %v4069_v55, %v4068_v54  ;;  %v236_v60 = vld [vmem:[%s8109_s1 + $0x8] sm:$0xff]  ;;  %v4070_v62 = vld [vmem:[%s8109_s1 + $0x280] sm:$0xff]  ;;  %v303_v0 = vrot.slane %v189_v57, 1  ;;  %v6497_v1 = vld [vmem:[%s6384_s28 + $0x30] sm:$0xff] }
  0x24   : > { %5514 = vmatprep.subr.bf16.mxu0 %v6394_v25  ;;  %8193 = vst [vmem:[#allocation11_spill] sm:$0xff] %v6462_v51  ;;  %v6488_v61 = vld [vmem:[%s6384_s28 + $0x28] sm:$0x3]  ;;  %v6500_v2 = vld [vmem:[%s6384_s28 + $0x38] sm:$0xff]  ;;  %v5405_v3 = vpack.c.bf16 %v236_v60, %v235_v59  ;;  %v6509_v8 = vld [vmem:[%s6384_s28 + $0x40] sm:$0x3]  ;;  %p6174_p5 = pnand %p6173_p3, %p6167_p0 }
  0x25   : > { %8194 = vst [vmem:[#allocation12_spill] sm:$0xff] %v6479_v58  ;;  %v4071_v63 = vld [vmem:[%s8109_s1 + $0x288] sm:$0xff]  ;;  %v1642_v4 = vrot.slane %v6488_v61, 1  ;;  %v4072_v9 = vld [vmem:[%s8109_s1 + $0x290] sm:$0xff]  ;;  %v8112_v10 = vrot.slane %v6497_v1, 1  ;;  %v1645_v11 = vrot.slane %v6500_v2, 1  ;;  %v304_v16 = vsel %vm299_vm0, %v301_v33, %v303_v0 }
  0x26   : > { %5388 = vmatpush3.bf16.msra.mxu1 %v5385_v22  ;;  %v6505_v5 = vld [vmem:[%s6384_s28 + $0x28] sm:$0x3]  ;;  %v5533_v6 = vpack.c.bf16 %v4071_v63, %v4070_v62  ;;  %v4073_v13 = vld [vmem:[%s8109_s1 + $0x298] sm:$0xff]  ;;  %v6523_v15 = vld [vmem:[%s6384_s28 + $0x50] sm:$0xff]  ;;  %v1647_v22 = vrot.slane %v6509_v8, 1 }
  0x27   : > { %5516 = vmatpush3.bf16.msra.mxu0 %v6394_v25  ;;  %5390 = vmatprep.subr.bf16.mxu1 %v5389_v36  ;;  %v6520_v14 = vld [vmem:[%s6384_s28 + $0x48] sm:$0xff]  ;;  %v308_v18 = vrot.slane %v6505_v5, 1  ;;  %v237_v19 = vld [vmem:[%s8109_s1 + $0x10] sm:$0xff]  ;;  %v238_v20 = vld [vmem:[%s8109_s1 + $0x18] sm:$0xff]  ;;  %v1643_v21 = vsel %vm299_vm0, %v6418_v35, %v1642_v4  ;;  %v5537_v24 = vpack.c.bf16 %v4073_v13, %v4072_v9  ;;  %v6544_v27 = vrot.slane %v6523_v15, 1 }
  0x28   : > { %5518 = vmatprep.subr.bf16.mxu0 %v6422_v37  ;;  %v6540_v23 = vld [vmem:[%s6384_s28 + $0x40] sm:$0x3]  ;;  %v1649_v26 = vrot.slane %v6520_v14, 1  ;;  %v6547_v30 = vld [vmem:[%s6384_s28 + $0x58] sm:$0x3]  ;;  %v1646_v34 = vsel %vm299_vm0, %v8112_v10, %v1645_v11  ;;  %v4075_v38 = vld [vmem:[%s8109_s1 + $0x2a8] sm:$0xff]  ;;  %v1648_v47 = vsel %vm299_vm0, %v1645_v11, %v1647_v22 }
  0x29   : > { %8195 = vst [vmem:[#allocation13_spill] sm:$0xff] %v6544_v27  ;;  %v4074_v33 = vld [vmem:[%s8109_s1 + $0x2a0] sm:$0xff]  ;;  %v6562_v40 = vld [vmem:[%s6384_s28 + $0x68] sm:$0xff]  ;;  %v309_v42 = vsel %vm299_vm0, %v6418_v35, %v308_v18  ;;  %v313_v43 = vrot.slane %v6540_v23, 1  ;;  %v1652_v48 = vrot.slane %v6547_v30, 1  ;;  %v4077_v55 = vld [vmem:[%s8109_s1 + $0x2b8] sm:$0xff] }
  0x2a   : > { %5392 = vmatpush3.bf16.msra.mxu1 %v5389_v36  ;;  %v5409_v36 = vpack.c.bf16 %v238_v20, %v237_v19  ;;  %v6559_v39 = vld [vmem:[%s6384_s28 + $0x60] sm:$0xff]  ;;  %v240_v46 = vld [vmem:[%s8109_s1 + $0x28] sm:$0xff]  ;;  %v198_v35 = vld [vmem:[%s6384_s28 + $0x58] sm:$0x3]  ;;  %v6579_v49 = vsel %vm299_vm0, %v1649_v26, %v6544_v27  ;;  %v6583_v53 = vrot.slane %v6562_v40, 1  ;;  %v2031_v25 = vrot.slane %v6500_v2, 2 }
  0x2b   : > { %5520 = vmatpush3.bf16.msra.mxu0 %v6422_v37  ;;  %5394 = vmatprep.subr.bf16.mxu1 %v5393_v44  ;;  %8196 = vst [vmem:[#allocation14_spill] sm:$0xff] %v6579_v49  ;;  %v1654_v52 = vrot.slane %v6559_v39, 1  ;;  %v6586_v54 = vld [vmem:[%s6384_s28 + $0x70] sm:$0x3]  ;;  %v6598_v57 = vld [vmem:[%s6384_s28 + $0x80] sm:$0xff]  ;;  %v314_v60 = vsel %vm299_vm0, %v1645_v11, %v313_v43  ;;  %v318_v62 = vrot.slane %v198_v35, 1 }
  0x2c   : > { %5522 = vmatprep.subr.bf16.mxu0 %v6446_v45  ;;  %8197 = vst [vmem:[#allocation15_spill] sm:$0xff] %v6583_v53  ;;  %v241_v63 = vld [vmem:[%s8109_s1 + $0x30] sm:$0xff]  ;;  %v242_v0 = vld [vmem:[%s8109_s1 + $0x38] sm:$0xff]  ;;  %v1657_v4 = vrot.slane %v6586_v54, 1  ;;  %v6621_v18 = vld [vmem:[%s6384_s28 + $0x88] sm:$0x3] }
  0x2d   : > { %v6614_v9 = vsel %vm299_vm0, %v1654_v52, %v6583_v53  ;;  %v4078_v19 = vld [vmem:[%s8109_s1 + $0x2c0] sm:$0xff]  ;;  %v4079_v20 = vld [vmem:[%s8109_s1 + $0x2c8] sm:$0xff]  ;;  %v6633_v22 = vld [vmem:[%s6384_s28 + $0x98] sm:$0xff]  ;;  %v319_v26 = vsel %vm299_vm0, %v6544_v27, %v318_v62 }
  0x2e   : > { %5396 = vmatpush3.bf16.msra.mxu1 %v5393_v44  ;;  %v239_v44 = vld [vmem:[%s8109_s1 + $0x20] sm:$0xff]  ;;  %8198 = vst [vmem:[#allocation16_spill] sm:$0xff] %v6614_v9  ;;  %v204_v43 = vld [vmem:[%s6384_s28 + $0x88] sm:$0x3]  ;;  %v4081_v52 = vld [vmem:[%s8109_s1 + $0x2d8] sm:$0xff] }
  0x2f   : > { %5524 = vmatpush3.bf16.msra.mxu0 %v6446_v45  ;;  %5398 = vmatprep.subr.bf16.mxu1 %v5397_v50  ;;  %v5413_v59 = vpack.c.bf16 %v240_v46, %v239_v44  ;;  %v5549_v46 = vpack.c.bf16 %v4079_v20, %v4078_v19  ;;  %v6658_v35 = vld [vmem:[%s6384_s28 + $0xa0] sm:$0x3]  ;;  %v328_v62 = vrot.slane %v204_v43, 1  ;;  %v250_v10 = vld [vmem:[%s8109_s1 + $0x78] sm:$0xff]  ;;  %v6765_v45 = vrot.slane %v6413_v32, 2  ;;  %v6803_v12 = vld [vmem:[%s6384_s28 + $0xf0] sm:$0xff] }
  0x30   : > { %5526 = vmatprep.subr.bf16.mxu0 %v6462_v51  ;;  %v6771_v37 = vld [vmem:[%s6384_s28 + $0xe0] sm:$0xff]  ;;  %v4144_v7 = vld [vmem:[%s8109_s1 + $0x350] sm:$0xff] }
  0x31   : > { %v3974_v17 = vld [vmem:[%s8109_s1 + $0x100] sm:$0xff] }
  0x32   : > { %5400 = vmatpush3.bf16.msra.mxu1 %v5397_v50  ;;  %v5541_v50 = vpack.c.bf16 %v4075_v38, %v4074_v33  ;;  %v1658_v38 = vsel %vm299_vm0, %v6583_v53, %v1657_v4  ;;  %v1667_v4 = vrot.slane %v6658_v35, 1 }
  0x33   : > { %5528 = vmatpush3.bf16.msra.mxu0 %v6462_v51  ;;  %5402 = vmatprep.subr.bf16.mxu1 %v5401_v56  ;;  %v2025_v51 = vrot.slane %v6410_v31, 2 }
  0x34   : > { %5530 = vmatprep.subr.bf16.mxu0 %v6479_v58 }
  0x36   : > { %5404 = vmatpush3.bf16.msra.mxu1 %v5401_v56  ;;  %v6595_v56 = vld [vmem:[%s6384_s28 + $0x78] sm:$0xff] }
  0x37   : > { %5532 = vmatpush3.bf16.msra.mxu0 %v6479_v58  ;;  %5406 = vmatprep.subr.bf16.mxu1 %v5405_v3  ;;  %v1659_v13 = vrot.slane %v6595_v56, 1 }
  0x38   : > { %5534 = vmatprep.subr.bf16.mxu0 %v5533_v6 }
  0x39   : > { %4686 = vmatmul.mubr.f32.vlgmr.msra.gmra.mrb[0].mxu1 %v304_v16  ;;  %v6618_v16 = vrot.slane %v6598_v57, 1 }
  0x3a   : > { %5006 = vmatmul.mubr.f32.vlgmr.msra.gmra.mrb[0].mxu0 %v1643_v21  ;;  %5408 = vmatpush3.bf16.msra.mxu1 %v5405_v3  ;;  %v1653_v3 = vsel %vm299_vm0, %v6544_v27, %v1652_v48  ;;  %v6630_v21 = vld [vmem:[%s6384_s28 + $0x90] sm:$0xff]  ;;  %v6655_v48 = vrot.slane %v6633_v22, 1 }
  0x3b   : > { %5536 = vmatpush3.bf16.msra.mxu0 %v5533_v6  ;;  %4688 = vmatprep.mubr.f32.mxu1 %v6435_v41  ;;  %v4076_v41 = vld [vmem:[%s8109_s1 + $0x2b0] sm:$0xff]  ;;  %8199 = vst [vmem:[#allocation17_spill] sm:$0xff] %v6618_v16  ;;  %v6651_v44 = vsel %vm299_vm0, %v1659_v13, %v6618_v16  ;;  %v329_v43 = vsel %vm299_vm0, %v6618_v16, %v328_v62 }
  0x3c   : > { %5008 = vmatprep.mubr.f32.mxu0 %v1646_v34  ;;  %5538 = vmatprep.subr.bf16.mxu0 %v5537_v24  ;;  %v201_v6 = vld [vmem:[%s6384_s28 + $0x70] sm:$0x3]  ;;  %v5545_v11 = vpack.c.bf16 %v4077_v55, %v4076_v41  ;;  %8200 = vst [vmem:[#allocation18_spill] sm:$0xff] %v6651_v44  ;;  %8201 = vst [vmem:[#allocation19_spill] sm:$0xff] %v6655_v48  ;;  %v6667_v41 = vld [vmem:[%s6384_s28 + $0xa8] sm:$0xff] }
  0x3d   : > { %4689 = vmatmul.mubr.f32.gmra.mrb[2].mxu1 %v309_v42  ;;  %5410 = vmatprep.subr.bf16.mxu1 %v5409_v36  ;;  %v323_v33 = vrot.slane %v201_v6, 1  ;;  %v1662_v42 = vrot.slane %v6621_v18, 1  ;;  %v6670_v55 = vld [vmem:[%s6384_s28 + $0xb0] sm:$0xff]  ;;  %v207_v6 = vld [vmem:[%s6384_s28 + $0xa0] sm:$0x3]  ;;  %v1669_v20 = vrot.slane %v6667_v41, 1 }
  0x3e   : > { %5009 = vmatmul.mubr.f32.gmra.mrb[2].mxu0 %v1648_v47  ;;  %4691 = vmatprep.mubr.f32.mxu1 %v1646_v34  ;;  %v243_v34 = vld [vmem:[%s8109_s1 + $0x40] sm:$0xff]  ;;  %v1664_v47 = vrot.slane %v6630_v21, 1 }
  0x3f   : > { %5540 = vmatpush3.bf16.msra.mxu0 %v5537_v24  ;;  %5011 = vmatprep.mubr.f32.mxu0 %v6579_v49  ;;  %v5417_v24 = vpack.c.bf16 %v242_v0, %v241_v63  ;;  %v245_v63 = vld [vmem:[%s8109_s1 + $0x50] sm:$0xff]  ;;  %v246_v0 = vld [vmem:[%s8109_s1 + $0x58] sm:$0xff] }
  0x40   : > { %5542 = vmatprep.subr.bf16.mxu0 %v5541_v50  ;;  %5412 = vmatpush3.bf16.msra.mxu1 %v5409_v36  ;;  %v244_v36 = vld [vmem:[%s8109_s1 + $0x48] sm:$0xff]  ;;  %v6688_v13 = vsel %vm299_vm0, %v1664_v47, %v6655_v48  ;;  %v247_v47 = vld [vmem:[%s8109_s1 + $0x60] sm:$0xff] }
  0x41   : > { %4692 = vmatmul.mubr.f32.gmra.mrb[4].mxu1 %v314_v60  ;;  %5414 = vmatprep.subr.bf16.mxu1 %v5413_v59  ;;  %v324_v60 = vsel %vm299_vm0, %v6583_v53, %v323_v33  ;;  %8202 = vst [vmem:[#allocation20_spill] sm:$0xff] %v6688_v13  ;;  %v4082_v33 = vld [vmem:[%s8109_s1 + $0x2e0] sm:$0xff]  ;;  %v6874_v53 = vld [vmem:[%s6384_s28 + $0x118] sm:$0x3] }
  0x42   : > { %5012 = vmatmul.mubr.f32.gmra.mrb[4].mxu0 %v1653_v3  ;;  %4694 = vmatprep.mubr.f32.mxu1 %v6579_v49  ;;  %v1663_v3 = vsel %vm299_vm0, %v6618_v16, %v1662_v42  ;;  %v5425_v42 = vpack.c.bf16 %v246_v0, %v245_v63  ;;  %v6723_v63 = vld [vmem:[%s6384_s28 + $0xb8] sm:$0x3]  ;;  %8216 = vst [vmem:[#allocation33_spill] sm:$0xff] %v6874_v53  ;;  %v358_v49 = vrot.slane %v6874_v53, 1  ;;  %v4143_v53 = vld [vmem:[%s8109_s1 + $0x348] sm:$0xff] }
  0x43   : > { %5544 = vmatpush3.bf16.msra.mxu0 %v5541_v50  ;;  %5014 = vmatprep.mubr.f32.mxu0 %v6614_v9  ;;  %v4080_v50 = vld [vmem:[%s8109_s1 + $0x2d0] sm:$0xff]  ;;  %8204 = vst [vmem:[#allocation22_spill] sm:$0xff] %v6723_v63 }
  0x44   : > { %5546 = vmatprep.subr.bf16.mxu0 %v5545_v11  ;;  %5416 = vmatpush3.bf16.msra.mxu1 %v5413_v59  ;;  %v5421_v59 = vpack.c.bf16 %v244_v36, %v243_v34  ;;  %v5553_v19 = vpack.c.bf16 %v4081_v52, %v4080_v50  ;;  %v4083_v34 = vld [vmem:[%s8109_s1 + $0x2e8] sm:$0xff]  ;;  %v6704_v36 = vld [vmem:[%s6384_s28 + $0xc0] sm:$0xff]  ;;  %v1668_v52 = vsel %vm299_vm0, %v6655_v48, %v1667_v4  ;;  %v4084_v4 = vld [vmem:[%s8109_s1 + $0x2f0] sm:$0xff] }
  0x45   : > { %4695 = vmatmul.mubr.f32.gmra.mrb[6].mxu1 %v319_v26  ;;  %5418 = vmatprep.subr.bf16.mxu1 %v5417_v24  ;;  %v6692_v26 = vrot.slane %v6670_v55, 1  ;;  %v248_v50 = vld [vmem:[%s8109_s1 + $0x68] sm:$0xff]  ;;  %v5557_v0 = vpack.c.bf16 %v4083_v34, %v4082_v33  ;;  %v338_v34 = vrot.slane %v6723_v63, 1  ;;  %v7003_v63 = vld [vmem:[%s6384_s28 + $0x160] sm:$0x3] }
  0x46   : > { %5015 = vmatmul.mubr.f32.gmra.mrb[6].mxu0 %v1658_v38  ;;  %4697 = vmatprep.mubr.f32.mxu1 %v6614_v9  ;;  %v6707_v38 = vld [vmem:[%s6384_s28 + $0xc8] sm:$0xff]  ;;  %v5429_v33 = vpack.c.bf16 %v248_v50, %v247_v47  ;;  %v6900_v9 = vrot.slane %v6562_v40, 2  ;;  %8229 = vst [vmem:[#allocation46_spill] sm:$0xff] %v7003_v63 }
  0x47   : > { %5548 = vmatpush3.bf16.msra.mxu0 %v5545_v11  ;;  %5017 = vmatprep.mubr.f32.mxu0 %v6651_v44  ;;  %8203 = vst [vmem:[#allocation21_spill] sm:$0xff] %v6692_v26  ;;  %v6695_v11 = vld [vmem:[%s6384_s28 + $0xb8] sm:$0x3]  ;;  %v6727_v62 = vsel %vm299_vm0, %v1669_v20, %v6692_v26 }
  0x48   : > { %5550 = vmatprep.subr.bf16.mxu0 %v5549_v46  ;;  %5420 = vmatpush3.bf16.msra.mxu1 %v5417_v24  ;;  %v333_v24 = vrot.slane %v207_v6, 1  ;;  %8205 = vst [vmem:[#allocation23_spill] sm:$0xff] %v6727_v62  ;;  %v6731_v6 = vrot.slane %v6707_v38, 1  ;;  %v4085_v20 = vld [vmem:[%s8109_s1 + $0x2f8] sm:$0xff]  ;;  %8218 = vst [vmem:[#allocation35_spill] sm:$0xff] %v6900_v9 }
  0x49   : > { %4698 = vmatmul.mubr.f32.gmra.mrb[8].mxu1 %v324_v60  ;;  %5422 = vmatprep.subr.bf16.mxu1 %v5421_v59  ;;  %v1672_v60 = vrot.slane %v6695_v11, 1  ;;  %v5561_v58 = vpack.c.bf16 %v4085_v20, %v4084_v4  ;;  %v4135_v4 = vld [vmem:[%s8109_s1 + $0x308] sm:$0xff] }
  0x4a   : > { %5018 = vmatmul.mubr.f32.gmra.mrb[8].mxu0 %v1663_v3  ;;  %4700 = vmatprep.mubr.f32.mxu1 %v6651_v44  ;;  %v1674_v3 = vrot.slane %v6704_v36, 1  ;;  %8206 = vst [vmem:[#allocation24_spill] sm:$0xff] %v6731_v6  ;;  %v4138_v44 = vld [vmem:[%s8109_s1 + $0x320] sm:$0xff] }
  0x4b   : > { %5552 = vmatpush3.bf16.msra.mxu0 %v5549_v46  ;;  %5020 = vmatprep.mubr.f32.mxu0 %v6688_v13  ;;  %v6734_v46 = vld [vmem:[%s6384_s28 + $0xd0] sm:$0x3]  ;;  %v1673_v47 = vsel %vm299_vm0, %v6692_v26, %v1672_v60  ;;  %v2028_v60 = vrot.slane %v6488_v61, 2  ;;  %v339_v61 = vsel %vm299_vm0, %v6692_v26, %v338_v34  ;;  %v6806_v26 = vld [vmem:[%s6384_s28 + $0xf8] sm:$0xff] }
  0x4c   : > { %5554 = vmatprep.subr.bf16.mxu0 %v5553_v19  ;;  %5424 = vmatpush3.bf16.msra.mxu1 %v5421_v59  ;;  %v334_v59 = vsel %vm299_vm0, %v6655_v48, %v333_v24  ;;  %v1677_v50 = vrot.slane %v6734_v46, 1  ;;  %v6761_v24 = vsel %vm299_vm0, %v1674_v3, %v6731_v6  ;;  %v4134_v3 = vld [vmem:[%s8109_s1 + $0x300] sm:$0xff]  ;;  %v4136_v48 = vld [vmem:[%s8109_s1 + $0x310] sm:$0xff] }
  0x4d   : > { %4701 = vmatmul.mubr.f32.gmra.mrb[10].mxu1 %v329_v43  ;;  %5426 = vmatprep.subr.bf16.mxu1 %v5425_v42  ;;  %v249_v43 = vld [vmem:[%s8109_s1 + $0x70] sm:$0xff]  ;;  %8208 = vst [vmem:[#allocation26_spill] sm:$0xff] %v6761_v24 }
  0x4e   : > { %5021 = vmatmul.mubr.f32.gmra.mrb[10].mxu0 %v1668_v52  ;;  %4703 = vmatprep.mubr.f32.mxu1 %v6688_v13  ;;  %v6757_v52 = vld [vmem:[%s6384_s28 + $0xd0] sm:$0x3]  ;;  %v5433_v20 = vpack.c.bf16 %v250_v10, %v249_v43  ;;  %v3975_v10 = vld [vmem:[%s8109_s1 + $0x108] sm:$0xff]  ;;  %v1678_v34 = vsel %vm299_vm0, %v6731_v6, %v1677_v50  ;;  %v2033_v50 = vrot.slane %v6509_v8, 2  ;;  %v4137_v13 = vld [vmem:[%s8109_s1 + $0x318] sm:$0xff] }
  0x4f   : > { %5556 = vmatpush3.bf16.msra.mxu0 %v5553_v19  ;;  %5023 = vmatprep.mubr.f32.mxu0 %v6727_v62  ;;  %8207 = vst [vmem:[#allocation25_spill] sm:$0xff] %v6757_v52  ;;  %v6768_v19 = vld [vmem:[%s6384_s28 + $0xd8] sm:$0xff]  ;;  %v6819_v16 = vpack.c.bf16 %v3975_v10, %v3974_v17  ;;  %v2029_v17 = vsel %vm879_vm1, %v6765_v45, %v2028_v60  ;;  %v6842_v10 = vld [vmem:[%s6384_s28 + $0x100] sm:$0x3]  ;;  %v6852_v60 = vld [vmem:[%s6384_s28 + $0x110] sm:$0xff] }
  0x50   : > { %5558 = vmatprep.subr.bf16.mxu0 %v5557_v0  ;;  %5428 = vmatpush3.bf16.msra.mxu1 %v5425_v42  ;;  %v343_v42 = vrot.slane %v6757_v52, 1  ;;  %v345_v43 = vrot.slane %v6768_v19, 1  ;;  %8214 = vst [vmem:[#allocation31_spill] sm:$0xff] %v6842_v10 }
  0x51   : > { %4704 = vmatmul.mubr.f32.gmra.mrb[12].mxu1 %v334_v59  ;;  %5430 = vmatprep.subr.bf16.mxu1 %v5429_v33  ;;  %v6800_v59 = vld [vmem:[%s6384_s28 + $0xe8] sm:$0x3] }
  0x52   : > { %5024 = vmatmul.mubr.f32.gmra.mrb[12].mxu0 %v1673_v47  ;;  %4706 = vmatprep.mubr.f32.mxu1 %v6727_v62  ;;  %v6797_v47 = vrot.slane %v6771_v37, 1  ;;  %8210 = vst [vmem:[#allocation28_spill] sm:$0xff] %v6800_v59  ;;  %v5565_v62 = vpack.c.bf16 %v4135_v4, %v4134_v3  ;;  %v348_v8 = vrot.slane %v6800_v59, 1  ;;  %v6827_v3 = vrot.slane %v6806_v26, 1 }
  0x53   : > { %5560 = vmatpush3.bf16.msra.mxu0 %v5557_v0  ;;  %5026 = vmatprep.mubr.f32.mxu0 %v6761_v24  ;;  %v6810_v0 = vsel %vm879_vm1, %v2025_v51, %v6765_v45  ;;  %v344_v51 = vsel %vm299_vm0, %v6731_v6, %v343_v42  ;;  %v5569_v6 = vpack.c.bf16 %v4137_v13, %v4136_v48  ;;  %v4139_v48 = vld [vmem:[%s8109_s1 + $0x328] sm:$0xff]  ;;  %v893_v13 = vrot.slane %v6540_v23, 2 }
  0x54   : > { %8209 = vst [vmem:[#allocation27_spill] sm:$0xff] %v6797_v47  ;;  %5562 = vmatprep.subr.bf16.mxu0 %v5561_v58  ;;  %5432 = vmatpush3.bf16.msra.mxu1 %v5429_v33  ;;  %v350_v33 = vrot.slane %v6803_v12, 1  ;;  %8211 = vst [vmem:[#allocation29_spill] sm:$0xff] %v6827_v3  ;;  %v6834_v4 = vsel %vm299_vm0, %v345_v43, %v6797_v47  ;;  %v888_v43 = vrot.slane %v6505_v5, 2 }
  0x55   : > { %4707 = vmatmul.mubr.f32.gmra.mrb[14].mxu1 %v339_v61  ;;  %5434 = vmatprep.subr.bf16.mxu1 %v5433_v20  ;;  %8212 = vst [vmem:[#allocation30_spill] sm:$0xff] %v6834_v4  ;;  %v8213_v61 = vrot.slane %v6497_v1, 2  ;;  %v349_v5 = vsel %vm299_vm0, %v6797_v47, %v348_v8  ;;  %v6885_v8 = vld [vmem:[%s6384_s28 + $0x128] sm:$0xff]  ;;  %v2040_v47 = vrot.slane %v6559_v39, 2  ;;  %v5573_v27 = vpack.c.bf16 %v4139_v48, %v4138_v44 }
  0x56   : > { %5027 = vmatmul.mubr.f32.gmra.mrb[14].mxu0 %v1678_v34  ;;  %4709 = vmatprep.mubr.f32.mxu1 %v6761_v24  ;;  %v2035_v34 = vrot.slane %v6520_v14, 2  ;;  %v6849_v24 = vld [vmem:[%s6384_s28 + $0x108] sm:$0xff]  ;;  %v2043_v44 = vrot.slane %v6586_v54, 2  ;;  %v6915_v48 = vrot.slane %v6885_v8, 1 }
  0x57   : > { %5564 = vmatpush3.bf16.msra.mxu0 %v5561_v58  ;;  %5085 = vmatprep.mubr.f32.mxu0 %v6810_v0  ;;  %v6839_v42 = vsel %vm879_vm1, %v8213_v61, %v2031_v25  ;;  %v6846_v58 = vrot.slane %v6523_v15, 2  ;;  %v2034_v61 = vsel %vm879_vm1, %v2031_v25, %v2033_v50  ;;  %v353_v50 = vrot.slane %v6842_v10, 1  ;;  %v6975_v10 = vld [vmem:[%s6384_s28 + $0x150] sm:$0xff] }
  0x58   : > { %5566 = vmatprep.subr.bf16.mxu0 %v5565_v62  ;;  %5436 = vmatpush3.bf16.msra.mxu1 %v5433_v20  ;;  %v6869_v20 = vsel %vm299_vm0, %v350_v33, %v6827_v3  ;;  %v355_v23 = vrot.slane %v6849_v24, 1  ;;  %v6889_v33 = vsel %vm879_vm1, %v6765_v45, %v888_v43  ;;  %v4141_v45 = vld [vmem:[%s8109_s1 + $0x338] sm:$0xff]  ;;  %8219 = vst [vmem:[#allocation36_spill] sm:$0xff] %v6915_v48 }
  0x59   : > { %4710 = vmatmul.mubr.f32.gmra.mrb[16].mxu1 %v344_v51  ;;  %5438 = vmatprep.subr.bf16.mxu1 %v6819_v16  ;;  %8215 = vst [vmem:[#allocation32_spill] sm:$0xff] %v6869_v20  ;;  %v2038_v51 = vrot.slane %v6547_v30, 2  ;;  %v6892_v30 = vsel %vm879_vm1, %v2031_v25, %v893_v13  ;;  %v4140_v25 = vld [vmem:[%s8109_s1 + $0x330] sm:$0xff]  ;;  %v6929_v54 = vsel %vm879_vm1, %v2040_v47, %v6900_v9  ;;  %v4142_v47 = vld [vmem:[%s8109_s1 + $0x340] sm:$0xff] }
  0x5a   : > { %5086 = vmatmul.mubr.f32.vlgmr.msra.gmra.mrb[0].mxu0 %v2029_v17  ;;  %4712 = vmatprep.mubr.f32.mxu1 %v6834_v4  ;;  %v6879_v17 = vrot.slane %v6852_v60, 1  ;;  %v6882_v4 = vld [vmem:[%s6384_s28 + $0x120] sm:$0xff] }
  0x5b   : > { %5568 = vmatpush3.bf16.msra.mxu0 %v5565_v62  ;;  %5088 = vmatprep.mubr.f32.mxu0 %v6839_v42  ;;  %v6896_v62 = vsel %vm879_vm1, %v2035_v34, %v6846_v58  ;;  %v354_v34 = vsel %vm299_vm0, %v6827_v3, %v353_v50  ;;  %v360_v43 = vrot.slane %v6882_v4, 1  ;;  %v2039_v13 = vsel %vm879_vm1, %v6846_v58, %v2038_v51  ;;  %v6939_v51 = vld [vmem:[%s6384_s28 + $0x140] sm:$0xff] }
  0x5c   : > { %8217 = vst [vmem:[#allocation34_spill] sm:$0xff] %v6879_v17  ;;  %5570 = vmatprep.subr.bf16.mxu0 %v5569_v6  ;;  %v2045_v50 = vrot.slane %v6595_v56, 2  ;;  %v6933_v3 = vrot.slane %v6598_v57, 2 }
  0x5d   : > { %4713 = vmatmul.mubr.f32.gmra.mrb[18].mxu1 %v349_v5  ;;  %v6925_v5 = vld [vmem:[%s6384_s28 + $0x130] sm:$0x3] }
  0x5e   : > { %5089 = vmatmul.mubr.f32.gmra.mrb[2].mxu0 %v2034_v61  ;;  %4715 = vmatprep.mubr.f32.mxu1 %v6869_v20  ;;  %v6922_v61 = vsel %vm299_vm0, %v355_v23, %v6879_v17  ;;  %8221 = vst [vmem:[#allocation38_spill] sm:$0xff] %v6925_v5  ;;  %8222 = vst [vmem:[#allocation39_spill] sm:$0xff] %v6933_v3  ;;  %v6936_v20 = vld [vmem:[%s6384_s28 + $0x138] sm:$0xff]  ;;  %v359_v23 = vsel %vm299_vm0, %v6879_v17, %v358_v49  ;;  %v363_v49 = vrot.slane %v6925_v5, 1 }
  0x5f   : > { %5091 = vmatprep.mubr.f32.mxu0 %v6896_v62  ;;  %5572 = vmatpush3.bf16.msra.mxu0 %v5569_v6  ;;  %8220 = vst [vmem:[#allocation37_spill] sm:$0xff] %v6922_v61  ;;  %v5577_v6 = vpack.c.bf16 %v4141_v45, %v4140_v25  ;;  %v2044_v25 = vsel %vm879_vm1, %v6900_v9, %v2043_v44  ;;  %v365_v17 = vrot.slane %v6936_v20, 1  ;;  %v6972_v5 = vrot.slane %v6633_v22, 2  ;;  %v7042_v9 = vld [vmem:[%s6384_s28 + $0x178] sm:$0x3] }
  0x60   : > { %5574 = vmatprep.subr.bf16.mxu0 %v5573_v27  ;;  %v6954_v45 = vsel %vm299_vm0, %v360_v43, %v6915_v48  ;;  %v6968_v44 = vsel %vm879_vm1, %v2045_v50, %v6933_v3  ;;  %v2050_v43 = vrot.slane %v6630_v21, 2  ;;  %v4145_v50 = vld [vmem:[%s8109_s1 + $0x358] sm:$0xff]  ;;  %v364_v59 = vsel %vm299_vm0, %v6915_v48, %v363_v49  ;;  %v7014_v48 = vld [vmem:[%s6384_s28 + $0x168] sm:$0xff]  ;;  %8232 = vst [vmem:[#allocation49_spill] sm:$0xff] %v7042_v9 }
  0x61   : > { %4716 = vmatmul.mubr.f32.gmra.mrb[20].mxu1 %v354_v34  ;;  %8223 = vst [vmem:[#allocation40_spill] sm:$0xff] %v6954_v45  ;;  %v2048_v34 = vrot.slane %v6621_v18, 2  ;;  %8226 = vst [vmem:[#allocation43_spill] sm:$0xff] %v6968_v44  ;;  %v6978_v18 = vld [vmem:[%s6384_s28 + $0x158] sm:$0xff]  ;;  %v2055_v49 = vrot.slane %v6667_v41, 2 }
  0x62   : > { %5092 = vmatmul.mubr.f32.gmra.mrb[4].mxu0 %v2039_v13  ;;  %4718 = vmatprep.mubr.f32.mxu1 %v6922_v61  ;;  %v6961_v13 = vrot.slane %v6939_v51, 1  ;;  %v6964_v61 = vld [vmem:[%s6384_s28 + $0x148] sm:$0x3] }
  0x63   : > { %5094 = vmatprep.mubr.f32.mxu0 %v6929_v54  ;;  %5576 = vmatpush3.bf16.msra.mxu0 %v5573_v27  ;;  %8225 = vst [vmem:[#allocation42_spill] sm:$0xff] %v6964_v61  ;;  %v5581_v27 = vpack.c.bf16 %v4143_v53, %v4142_v47  ;;  %v368_v52 = vrot.slane %v6964_v61, 1  ;;  %v2053_v53 = vrot.slane %v6658_v35, 2  ;;  %v7007_v35 = vsel %vm879_vm1, %v2050_v43, %v6972_v5  ;;  %v4147_v43 = vld [vmem:[%s8109_s1 + $0x368] sm:$0xff] }
  0x64   : > { %8224 = vst [vmem:[#allocation41_spill] sm:$0xff] %v6961_v13  ;;  %5578 = vmatprep.subr.bf16.mxu0 %v5577_v6  ;;  %v6996_v47 = vsel %vm299_vm0, %v365_v17, %v6961_v13  ;;  %v7017_v17 = vld [vmem:[%s6384_s28 + $0x170] sm:$0xff]  ;;  %v5585_v61 = vpack.c.bf16 %v4145_v50, %v4144_v7  ;;  %v373_v7 = vrot.slane %v7003_v63, 1  ;;  %v2058_v50 = vrot.slane %v6695_v11, 2 }
  0x65   : > { %4719 = vmatmul.mubr.f32.gmra.mrb[22].mxu1 %v359_v23  ;;  %v2049_v23 = vsel %vm879_vm1, %v6933_v3, %v2048_v34  ;;  %8227 = vst [vmem:[#allocation44_spill] sm:$0xff] %v6996_v47  ;;  %v7011_v34 = vrot.slane %v6670_v55, 2  ;;  %v369_v3 = vsel %vm299_vm0, %v6961_v13, %v368_v52  ;;  %v7050_v13 = vrot.slane %v6707_v38, 2  ;;  %v4148_v11 = vld [vmem:[%s8109_s1 + $0x370] sm:$0xff] }
  0x66   : > { %5095 = vmatmul.mubr.f32.gmra.mrb[6].mxu0 %v2044_v25  ;;  %4721 = vmatprep.mubr.f32.mxu1 %v6954_v45  ;;  %v370_v25 = vrot.slane %v6975_v10, 1  ;;  %v7000_v45 = vrot.slane %v6978_v18, 1  ;;  %v378_v63 = vrot.slane %v7042_v9, 1 }
  0x67   : > { %5097 = vmatprep.mubr.f32.mxu0 %v6968_v44  ;;  %5580 = vmatpush3.bf16.msra.mxu0 %v5577_v6  ;;  %v4146_v6 = vld [vmem:[%s8109_s1 + $0x360] sm:$0xff]  ;;  %v2054_v44 = vsel %vm879_vm1, %v6972_v5, %v2053_v53  ;;  %v7046_v52 = vsel %vm879_vm1, %v2055_v49, %v7011_v34  ;;  %v2060_v53 = vrot.slane %v6704_v36, 2 }
  0x68   : > { %8228 = vst [vmem:[#allocation45_spill] sm:$0xff] %v7000_v45  ;;  %5582 = vmatprep.subr.bf16.mxu0 %v5581_v27  ;;  %v374_v49 = vsel %vm299_vm0, %v7000_v45, %v373_v7  ;;  %v2065_v7 = vrot.slane %v6768_v19, 2 }
  0x69   : > { %4722 = vmatmul.mubr.f32.gmra.mrb[24].mxu1 %v364_v59  ;;  %v7034_v59 = vsel %vm299_vm0, %v370_v25, %v7000_v45  ;;  %v5589_v25 = vpack.c.bf16 %v4147_v43, %v4146_v6  ;;  %v2063_v43 = vrot.slane %v6734_v46, 2  ;;  %v7076_v45 = vrot.slane %v6771_v37, 2  ;;  %v4151_v46 = vld [vmem:[%s8109_s1 + $0x388] sm:$0xff] }
  0x6a   : > { %5098 = vmatmul.mubr.f32.gmra.mrb[8].mxu0 %v2049_v23  ;;  %4724 = vmatprep.mubr.f32.mxu1 %v6996_v47  ;;  %8230 = vst [vmem:[#allocation47_spill] sm:$0xff] %v7034_v59  ;;  %v375_v23 = vrot.slane %v7014_v48, 1  ;;  %v7039_v47 = vrot.slane %v7017_v17, 1 }
  0x6b   : > { %5100 = vmatprep.mubr.f32.mxu0 %v7007_v35  ;;  %5584 = vmatpush3.bf16.msra.mxu0 %v5581_v27  ;;  %v4149_v27 = vld [vmem:[%s8109_s1 + $0x378] sm:$0xff] }
  0x6c   : > { %8231 = vst [vmem:[#allocation48_spill] sm:$0xff] %v7039_v47  ;;  %5586 = vmatprep.subr.bf16.mxu0 %v5585_v61  ;;  %v7067_v6 = vsel %vm299_vm0, %v375_v23, %v7039_v47  ;;  %v4150_v23 = vld [vmem:[%s8109_s1 + $0x380] sm:$0xff] }
  0x6d   : > { %4725 = vmatmul.mubr.f32.gmra.mrb[26].mxu1 %v369_v3  ;;  %v2059_v3 = vsel %vm879_vm1, %v7011_v34, %v2058_v50  ;;  %8233 = vst [vmem:[#allocation50_spill] sm:$0xff] %v7067_v6  ;;  %v5593_v50 = vpack.c.bf16 %v4149_v27, %v4148_v11  ;;  %v7093_v27 = vsel %vm879_vm1, %v2065_v7, %v7076_v45 }
  0x6e   : > { %5101 = vmatmul.mubr.f32.gmra.mrb[10].mxu0 %v2054_v44  ;;  %4727 = vmatprep.mubr.f32.mxu1 %v7034_v59  ;;  %v7072_v44 = vsel %vm879_vm1, %v2060_v53, %v7050_v13  ;;  %v4016_v59 = vld [vmem:[%s6384_s28 + $0xe8] sm:$0x3]  ;;  %v2064_v53 = vsel %vm879_vm1, %v7050_v13, %v2063_v43 }
  0x6f   : > { %5103 = vmatprep.mubr.f32.mxu0 %v7046_v52  ;;  %5588 = vmatpush3.bf16.msra.mxu0 %v5585_v61  ;;  %v379_v61 = vsel %vm299_vm0, %v7039_v47, %v378_v63  ;;  %v2068_v11 = vrot.slane %v4016_v59, 2  ;;  %v7100_v63 = vpack.c.bf16 %v4151_v46, %v4150_v23  ;;  %v3976_v59 = vld [vmem:[%s8109_s1 + $0x110] sm:$0xff]  ;;  %v2075_v46 = vrot.slane %v6849_v24, 2 }
  0x70   : > { %5590 = vmatprep.subr.bf16.mxu0 %v5589_v25 }
  0x71   : > { %4728 = vmatmul.mubr.f32.gmra.mrb[28].mxu1 %v374_v49  ;;  %v2070_v49 = vrot.slane %v6803_v12, 2  ;;  %v2069_v43 = vsel %vm879_vm1, %v7076_v45, %v2068_v11 }
  0x72   : > { %5104 = vmatmul.mubr.f32.gmra.mrb[12].mxu0 %v2059_v3  ;;  %4730 = vmatprep.mubr.f32.mxu1 %v7067_v6  ;;  %v7097_v3 = vrot.slane %v6806_v26, 2  ;;  %v4019_v6 = vld [vmem:[%s6384_s28 + $0x100] sm:$0x3] }
  0x73   : > { %5106 = vmatprep.mubr.f32.mxu0 %v7072_v44  ;;  %5592 = vmatpush3.bf16.msra.mxu0 %v5589_v25  ;;  %v3977_v25 = vld [vmem:[%s8109_s1 + $0x118] sm:$0xff]  ;;  %v2073_v7 = vrot.slane %v4019_v6, 2  ;;  %v3979_v6 = vld [vmem:[%s8109_s1 + $0x128] sm:$0xff] }
  0x74   : > { %5594 = vmatprep.subr.bf16.mxu0 %v5593_v50  ;;  %v7114_v23 = vsel %vm879_vm1, %v2070_v49, %v7097_v3  ;;  %v5441_v47 = vpack.c.bf16 %v3977_v25, %v3976_v59  ;;  %v2080_v49 = vrot.slane %v6882_v4, 2  ;;  %v7140_v59 = vrot.slane %v6885_v8, 2 }
  0x75   : > { %4731 = vmatmul.mubr.f32.gmra.mrb[30].mxu1 %v379_v61  ;;  %v7118_v61 = vrot.slane %v6852_v60, 2 }
  0x76   : > { %5107 = vmatmul.mubr.f32.gmra.mrb[14].mxu0 %v2064_v53  ;;  %4765 = vmatprep.mubr.f32.mxu1 %v6403_v28  ;;  %v4022_v53 = vld [vmem:[%s6384_s28 + $0x118] sm:$0x3]  ;;  %v3978_v28 = vld [vmem:[%s8109_s1 + $0x120] sm:$0xff]  ;;  %8236 = vst [vmem:[#allocation53_spill] sm:$0xff] %v7140_v59 }
  0x77   : > { %5109 = vmatprep.mubr.f32.mxu0 %v7093_v27  ;;  %5596 = vmatpush3.bf16.msra.mxu0 %v5593_v50  ;;  %8234 = vst [vmem:[#allocation51_spill] sm:$0xff] %v7118_v61  ;;  %v2074_v50 = vsel %vm879_vm1, %v7097_v3, %v2073_v7  ;;  %v2078_v11 = vrot.slane %v4022_v53, 2  ;;  %v5445_v25 = vpack.c.bf16 %v3979_v6, %v3978_v28  ;;  %v2085_v53 = vrot.slane %v6936_v20, 2  ;;  %v4028_v6 = vld [vmem:[%s6384_s28 + $0x148] sm:$0x3] }
  0x78   : > { %5598 = vmatprep.subr.bf16.mxu0 %v7100_v63  ;;  %v7160_v28 = vrot.slane %v6939_v51, 2 }
  0x79   : > { %4766 = vmatmul.mubr.f32.vlgmr.msra.gmra.mrb[0].mxu1 %v6406_v29  ;;  %v7136_v29 = vsel %vm879_vm1, %v2075_v46, %v7118_v61  ;;  %v2079_v7 = vsel %vm879_vm1, %v7118_v61, %v2078_v11  ;;  %v3983_v11 = vld [vmem:[%s8109_s1 + $0x148] sm:$0xff] }
  0x7a   : > { %5110 = vmatmul.mubr.f32.gmra.mrb[16].mxu0 %v2069_v43  ;;  %5440 = vmatpush3.bf16.msra.mxu1 %v6819_v16  ;;  %8235 = vst [vmem:[#allocation52_spill] sm:$0xff] %v7136_v29  ;;  %v4025_v16 = vld [vmem:[%s6384_s28 + $0x130] sm:$0x3]  ;;  %v3981_v43 = vld [vmem:[%s8109_s1 + $0x138] sm:$0xff]  ;;  %8238 = vst [vmem:[#allocation55_spill] sm:$0xff] %v7160_v28 }
  0x7b   : > { %4768 = vmatprep.mubr.f32.mxu1 %v6410_v31  ;;  %5112 = vmatprep.mubr.f32.mxu0 %v7114_v23  ;;  %v3980_v31 = vld [vmem:[%s8109_s1 + $0x130] sm:$0xff]  ;;  %v2083_v46 = vrot.slane %v4025_v16, 2  ;;  %v2088_v16 = vrot.slane %v4028_v6, 2 }
  0x7c   : > { %5442 = vmatprep.subr.bf16.mxu1 %v5441_v47 }
  0x7d   : > { %4769 = vmatmul.mubr.f32.gmra.mrb[2].mxu1 %v6413_v32  ;;  %v7156_v32 = vsel %vm879_vm1, %v2080_v49, %v7140_v59  ;;  %v2084_v49 = vsel %vm879_vm1, %v7140_v59, %v2083_v46  ;;  %v3985_v46 = vld [vmem:[%s8109_s1 + $0x158] sm:$0xff]  ;;  %v7200_v59 = vrot.slane %v7017_v17, 2 }
  0x7e   : > { %5113 = vmatmul.mubr.f32.gmra.mrb[18].mxu0 %v2074_v50  ;;  %4771 = vmatprep.mubr.f32.mxu1 %v6497_v1  ;;  %8237 = vst [vmem:[#allocation54_spill] sm:$0xff] %v7156_v32  ;;  %v5449_v50 = vpack.c.bf16 %v3981_v43, %v3980_v31  ;;  %v2090_v31 = vrot.slane %v6975_v10, 2  ;;  %v7180_v43 = vrot.slane %v6978_v18, 2 }
  0x7f   : > { %5115 = vmatprep.mubr.f32.mxu0 %v7136_v29  ;;  %5444 = vmatpush3.bf16.msra.mxu1 %v5441_v47  ;;  %v3982_v47 = vld [vmem:[%s8109_s1 + $0x140] sm:$0xff]  ;;  %v4037_v29 = vld [vmem:[%s6384_s28 + $0x190] sm:$0x3] }
  0x80   : > { %5446 = vmatprep.subr.bf16.mxu1 %v5445_v25  ;;  %v5453_v9 = vpack.c.bf16 %v3983_v11, %v3982_v47  ;;  %v7196_v47 = vsel %vm879_vm1, %v2090_v31, %v7180_v43  ;;  %v2095_v11 = vrot.slane %v7014_v48, 2  ;;  %v3987_v31 = vld [vmem:[%s8109_s1 + $0x168] sm:$0xff] }
  0x81   : > { %4772 = vmatmul.mubr.f32.gmra.mrb[4].mxu1 %v6500_v2  ;;  %v7176_v2 = vsel %vm879_vm1, %v2085_v53, %v7160_v28  ;;  %v2089_v53 = vsel %vm879_vm1, %v7160_v28, %v2088_v16  ;;  %v7208_v16 = vld [vmem:[%s6384_s28 + $0x188] sm:$0xff] }
  0x82   : > { %5116 = vmatmul.mubr.f32.gmra.mrb[20].mxu0 %v2079_v7  ;;  %4774 = vmatprep.mubr.f32.mxu1 %v6520_v14  ;;  %8239 = vst [vmem:[#allocation56_spill] sm:$0xff] %v7176_v2  ;;  %v4031_v7 = vld [vmem:[%s6384_s28 + $0x160] sm:$0x3]  ;;  %v7226_v61 = vrot.slane %v7208_v16, 2 }
  0x83   : > { %5118 = vmatprep.mubr.f32.mxu0 %v7156_v32  ;;  %5448 = vmatpush3.bf16.msra.mxu1 %v5445_v25  ;;  %v3984_v25 = vld [vmem:[%s8109_s1 + $0x150] sm:$0xff]  ;;  %v2093_v6 = vrot.slane %v4031_v7, 2  ;;  %v4034_v32 = vld [vmem:[%s6384_s28 + $0x178] sm:$0x3] }
  0x84   : > { %5450 = vmatprep.subr.bf16.mxu1 %v5449_v50 }
  0x85   : > { %4775 = vmatmul.mubr.f32.gmra.mrb[6].mxu1 %v6523_v15  ;;  %v2094_v7 = vsel %vm879_vm1, %v7180_v43, %v2093_v6  ;;  %v3988_v6 = vld [vmem:[%s8109_s1 + $0x170] sm:$0xff] }
  0x86   : > { %5119 = vmatmul.mubr.f32.gmra.mrb[22].mxu0 %v2084_v49  ;;  %4777 = vmatprep.mubr.f32.mxu1 %v6559_v39  ;;  %v7204_v49 = vld [vmem:[%s6384_s28 + $0x180] sm:$0xff] }
  0x87   : > { %5121 = vmatprep.mubr.f32.mxu0 %v7176_v2  ;;  %5452 = vmatpush3.bf16.msra.mxu1 %v5449_v50  ;;  %v5457_v2 = vpack.c.bf16 %v3985_v46, %v3984_v25  ;;  %v3986_v50 = vld [vmem:[%s8109_s1 + $0x160] sm:$0xff]  ;;  %v2098_v25 = vrot.slane %v4034_v32, 2  ;;  %v7222_v46 = vsel %vm879_vm1, %v2095_v11, %v7200_v59  ;;  %v2100_v28 = vrot.slane %v7204_v49, 2 }
  0x88   : > { %5454 = vmatprep.subr.bf16.mxu1 %v5453_v9  ;;  %8240 = vst [vmem:[#allocation57_spill] sm:$0xff] %v7222_v46  ;;  %v2103_v11 = vrot.slane %v4037_v29, 2 }
  0x89   : > { %4778 = vmatmul.mubr.f32.gmra.mrb[8].mxu1 %v6562_v40  ;;  %v2099_v32 = vsel %vm879_vm1, %v7200_v59, %v2098_v25  ;;  %v4153_v25 = vld [vmem:[%s8109_s1 + $0x398] sm:$0xff] }
  0x8a   : > { %5122 = vmatmul.mubr.f32.gmra.mrb[24].mxu0 %v2089_v53  ;;  %4780 = vmatprep.mubr.f32.mxu1 %v6595_v56  ;;  %v5461_v53 = vpack.c.bf16 %v3987_v31, %v3986_v50  ;;  %v7242_v50 = vsel %vm879_vm1, %v2100_v28, %v7226_v61  ;;  %v2104_v29 = vsel %vm879_vm1, %v7226_v61, %v2103_v11  ;;  %v4156_v11 = vld [vmem:[%s8109_s1 + $0x3b0] sm:$0xff] }
  0x8b   : > { %5124 = vmatprep.mubr.f32.mxu0 %v7196_v47  ;;  %5456 = vmatpush3.bf16.msra.mxu1 %v5453_v9  ;;  %v3989_v9 = vld [vmem:[%s8109_s1 + $0x178] sm:$0xff] }
  0x8c   : > { %5458 = vmatprep.subr.bf16.mxu1 %v5457_v2  ;;  %v5465_v31 = vpack.c.bf16 %v3989_v9, %v3988_v6  ;;  %v4155_v6 = vld [vmem:[%s8109_s1 + $0x3a8] sm:$0xff]  ;;  %v7275_v9 = vld [vmem:[%s6384_s28 + $0x38] sm:$0xff] }
  0x8d   : > { %4781 = vmatmul.mubr.f32.gmra.mrb[10].mxu1 %v6598_v57 }
  0x8e   : > { %5125 = vmatmul.mubr.f32.gmra.mrb[26].mxu0 %v2094_v7  ;;  %4783 = vmatprep.mubr.f32.mxu1 %v6630_v21  ;;  %v4038_v7 = vld [vmem:[%s8109_s1 + $0x180] sm:$0xff] }
  0x8f   : > { %5127 = vmatprep.mubr.f32.mxu0 %v7222_v46  ;;  %5460 = vmatpush3.bf16.msra.mxu1 %v5457_v2  ;;  %v4039_v46 = vld [vmem:[%s8109_s1 + $0x188] sm:$0xff]  ;;  %v4152_v2 = vld [vmem:[%s8109_s1 + $0x390] sm:$0xff] }
  0x90   : > { %5462 = vmatprep.subr.bf16.mxu1 %v5461_v53  ;;  %v7255_v28 = vpack.c.bf16 %v4039_v46, %v4038_v7  ;;  %v4154_v46 = vld [vmem:[%s8109_s1 + $0x3a0] sm:$0xff]  ;;  %v4159_v7 = vld [vmem:[%s8109_s1 + $0x3c8] sm:$0xff] }
  0x91   : > { %4784 = vmatmul.mubr.f32.gmra.mrb[12].mxu1 %v6633_v22 }
  0x92   : > { %5128 = vmatmul.mubr.f32.gmra.mrb[28].mxu0 %v2099_v32  ;;  %4786 = vmatprep.mubr.f32.mxu1 %v6667_v41  ;;  %v5605_v32 = vpack.c.bf16 %v4155_v6, %v4154_v46 }
  0x93   : > { %5130 = vmatprep.mubr.f32.mxu0 %v7242_v50  ;;  %5464 = vmatpush3.bf16.msra.mxu1 %v5461_v53  ;;  %v5601_v53 = vpack.c.bf16 %v4153_v25, %v4152_v2  ;;  %v4163_v2 = vld [vmem:[%s8109_s1 + $0x3e8] sm:$0xff]  ;;  %v4165_v25 = vld [vmem:[%s8109_s1 + $0x3f8] sm:$0xff] }
  0x94   : > { %5466 = vmatprep.subr.bf16.mxu1 %v5465_v31 }
  0x95   : > { %4787 = vmatmul.mubr.f32.gmra.mrb[14].mxu1 %v6670_v55 }
  0x96   : > { %5131 = vmatmul.mubr.f32.gmra.mrb[30].mxu0 %v2104_v29  ;;  %4789 = vmatprep.mubr.f32.mxu1 %v6704_v36  ;;  %v4161_v29 = vld [vmem:[%s8109_s1 + $0x3d8] sm:$0xff] }
  0x97   : > { %5165 = vmatprep.mubr.f32.mxu0 %v6497_v1  ;;  %5468 = vmatpush3.bf16.msra.mxu1 %v5465_v31  ;;  %v4157_v31 = vld [vmem:[%s8109_s1 + $0x3b8] sm:$0xff] }
  0x98   : > { %5470 = vmatprep.subr.bf16.mxu1 %v7255_v28 }
  0x99   : > { %4790 = vmatmul.mubr.f32.gmra.mrb[16].mxu1 %v6707_v38 }
  0x9a   : > { %5166 = vmatmul.mubr.f32.vlgmr.msra.gmra.mrb[0].mxu0 %v7275_v9  ;;  %4792 = vmatprep.mubr.f32.mxu1 %v6768_v19 }
  0x9b   : > { %5600 = vmatpush3.bf16.msra.mxu0 %v7100_v63  ;;  %5168 = vmatprep.mubr.f32.mxu0 %v6520_v14  ;;  %v5609_v14 = vpack.c.bf16 %v4157_v31, %v4156_v11  ;;  %v4158_v63 = vld [vmem:[%s8109_s1 + $0x3c0] sm:$0xff]  ;;  %v6122_v11 = vld [vmem:[%s6384_s28 + $0x10] sm:$0x3] }
  0x9c   : > { %5602 = vmatprep.subr.bf16.mxu0 %v5601_v53  ;;  %v883_v31 = vrot.slane %v6122_v11, 2 }
  0x9d   : > { %4793 = vmatmul.mubr.f32.gmra.mrb[18].mxu1 %v6771_v37 }
  0x9e   : > { %5169 = vmatmul.mubr.f32.gmra.mrb[2].mxu0 %v6523_v15  ;;  %4795 = vmatprep.mubr.f32.mxu1 %v6803_v12  ;;  %v5613_v15 = vpack.c.bf16 %v4159_v7, %v4158_v63  ;;  %v4040_v63 = vld [vmem:[%s8109_s1 + $0x190] sm:$0xff] }
  0x9f   : > { %5171 = vmatprep.mubr.f32.mxu0 %v6559_v39  ;;  %5604 = vmatpush3.bf16.msra.mxu0 %v5601_v53  ;;  %v4160_v39 = vld [vmem:[%s8109_s1 + $0x3d0] sm:$0xff]  ;;  %v6121_v53 = vld [vmem:[%s6384_s28 + $0x8] sm:$0xff] }
  0xa0   : > { %5606 = vmatprep.subr.bf16.mxu0 %v5605_v32  ;;  %v881_v46 = vrot.slane %v6121_v53, 2 }
  0xa1   : > { %4796 = vmatmul.mubr.f32.gmra.mrb[20].mxu1 %v6806_v26 }
  0xa2   : > { %5172 = vmatmul.mubr.f32.gmra.mrb[4].mxu0 %v6562_v40  ;;  %4798 = vmatprep.mubr.f32.mxu1 %v6849_v24  ;;  %v5617_v40 = vpack.c.bf16 %v4161_v29, %v4160_v39  ;;  %v4043_v39 = vld [vmem:[%s8109_s1 + $0x1a8] sm:$0xff]  ;;  %v4045_v29 = vld [vmem:[%s8109_s1 + $0x1b8] sm:$0xff] }
  0xa3   : > { %5174 = vmatprep.mubr.f32.mxu0 %v6595_v56  ;;  %5608 = vmatpush3.bf16.msra.mxu0 %v5605_v32  ;;  %v4162_v56 = vld [vmem:[%s8109_s1 + $0x3e0] sm:$0xff] }
  0xa4   : > { %5610 = vmatprep.subr.bf16.mxu0 %v5609_v14  ;;  %v4166_v32 = vld [vmem:[%s8109_s1 + $0x400] sm:$0xff] }
  0xa5   : > { %4799 = vmatmul.mubr.f32.gmra.mrb[22].mxu1 %v6852_v60 }
  0xa6   : > { %5175 = vmatmul.mubr.f32.gmra.mrb[6].mxu0 %v6598_v57  ;;  %4801 = vmatprep.mubr.f32.mxu1 %v6882_v4  ;;  %v5621_v57 = vpack.c.bf16 %v4163_v2, %v4162_v56  ;;  %v8241_v56 = vld [vmem:[#allocation35_spill] sm:$0xff]  ;;  %v6125_v2 = vld [vmem:[%s6384_s28 + $0x88] sm:$0x3] }
  0xa7   : > { %5177 = vmatprep.mubr.f32.mxu0 %v6630_v21  ;;  %5612 = vmatpush3.bf16.msra.mxu0 %v5609_v14  ;;  %v4164_v21 = vld [vmem:[%s8109_s1 + $0x3f0] sm:$0xff] }
  0xa8   : > { %5614 = vmatprep.subr.bf16.mxu0 %v5613_v15  ;;  %v5625_v6 = vpack.c.bf16 %v4165_v25, %v4164_v21  ;;  %v4050_v25 = vld [vmem:[%s8109_s1 + $0x1e0] sm:$0xff] }
  0xa9   : > { %4802 = vmatmul.mubr.f32.gmra.mrb[24].mxu1 %v6885_v8 }
  0xaa   : > { %5178 = vmatmul.mubr.f32.gmra.mrb[8].mxu0 %v6633_v22  ;;  %4804 = vmatprep.mubr.f32.mxu1 %v6936_v20  ;;  %v6120_v22 = vld [vmem:[%s6384_s28] sm:$0xff] }
  0xab   : > { %5180 = vmatprep.mubr.f32.mxu0 %v6667_v41  ;;  %5616 = vmatpush3.bf16.msra.mxu0 %v5613_v15  ;;  %v880_v41 = vrot.slane %v6120_v22, 2  ;;  %v4042_v15 = vld [vmem:[%s8109_s1 + $0x1a0] sm:$0xff]  ;;  %v8242_v22 = vld [vmem:[#allocation43_spill] sm:$0xff] }
  0xac   : > { %5618 = vmatprep.subr.bf16.mxu0 %v5617_v40 }
  0xad   : > { %4805 = vmatmul.mubr.f32.gmra.mrb[26].mxu1 %v6939_v51 }
  0xae   : > { %5181 = vmatmul.mubr.f32.gmra.mrb[10].mxu0 %v6670_v55  ;;  %4807 = vmatprep.mubr.f32.mxu1 %v6975_v10  ;;  %v4167_v55 = vld [vmem:[%s8109_s1 + $0x408] sm:$0xff] }
  0xaf   : > { %5183 = vmatprep.mubr.f32.mxu0 %v6704_v36  ;;  %5620 = vmatpush3.bf16.msra.mxu0 %v5617_v40  ;;  %v882_v36 = vsel %vm879_vm1, %v880_v41, %v881_v46  ;;  %v7345_v14 = vpack.c.bf16 %v4167_v55, %v4166_v32  ;;  %v4048_v40 = vld [vmem:[%s8109_s1 + $0x1d0] sm:$0xff]  ;;  %v8244_v55 = vld [vmem:[#allocation22_spill] sm:$0xff] }
  0xb0   : > { %5622 = vmatprep.subr.bf16.mxu0 %v5621_v57  ;;  %v8243_v41 = vld [vmem:[#allocation39_spill] sm:$0xff]  ;;  %v918_v11 = vrot.slane %v8244_v55, 2 }
  0xb1   : > { %4808 = vmatmul.mubr.f32.gmra.mrb[28].mxu1 %v6978_v18  ;;  %v4052_v32 = vld [vmem:[%s8109_s1 + $0x1f0] sm:$0xff] }
  0xb2   : > { %5184 = vmatmul.mubr.f32.gmra.mrb[12].mxu0 %v6707_v38  ;;  %4810 = vmatprep.mubr.f32.mxu1 %v7014_v48  ;;  %v4041_v38 = vld [vmem:[%s8109_s1 + $0x198] sm:$0xff] }
  0xb3   : > { %5186 = vmatprep.mubr.f32.mxu0 %v6768_v19  ;;  %5624 = vmatpush3.bf16.msra.mxu0 %v5621_v57  ;;  %v884_v19 = vsel %vm879_vm1, %v881_v46, %v883_v31  ;;  %v5473_v7 = vpack.c.bf16 %v4041_v38, %v4040_v63  ;;  %v908_v57 = vrot.slane %v6125_v2, 2  ;;  %v7429_v31 = vld [vmem:[%s6384_s28 + $0x198] sm:$0xff]  ;;  %v7433_v63 = vld [vmem:[%s6384_s28 + $0x40] sm:$0x3]  ;;  %v919_v38 = vsel %vm879_vm1, %v7011_v34, %v918_v11 }
  0xb4   : > { %5626 = vmatprep.subr.bf16.mxu0 %v5625_v6  ;;  %v8253_v11 = vld [vmem:[#allocation16_spill] sm:$0xff] }
  0xb5   : > { %4811 = vmatmul.mubr.f32.gmra.mrb[30].mxu1 %v7017_v17  ;;  %v909_v53 = vsel %vm879_vm1, %v8243_v41, %v908_v57  ;;  %v8249_v57 = vld [vmem:[#allocation31_spill] sm:$0xff] }
  0xb6   : > { %5187 = vmatmul.mubr.f32.gmra.mrb[14].mxu0 %v6771_v37  ;;  %4845 = vmatprep.mubr.f32.mxu1 %v882_v36  ;;  %v4044_v37 = vld [vmem:[%s8109_s1 + $0x1b0] sm:$0xff]  ;;  %v2785_v36 = vrot.slane %v7275_v9, 1 }
  0xb7   : > { %5189 = vmatprep.mubr.f32.mxu0 %v6803_v12  ;;  %5628 = vmatpush3.bf16.msra.mxu0 %v5625_v6  ;;  %v5477_v12 = vpack.c.bf16 %v4043_v39, %v4042_v15  ;;  %v7442_v15 = vld [vmem:[%s6384_s28 + $0x1a0] sm:$0xff]  ;;  %v2787_v39 = vrot.slane %v7433_v63, 1 }
  0xb8   : > { %5630 = vmatprep.subr.bf16.mxu0 %v7345_v14 }
  0xb9   : > { %4846 = vmatmul.mubr.f32.vlgmr.msra.gmra.mrb[0].mxu1 %v884_v19  ;;  %v8245_v19 = vld [vmem:[#allocation25_spill] sm:$0xff] }
  0xba   : > { %5190 = vmatmul.mubr.f32.gmra.mrb[16].mxu0 %v6806_v26  ;;  %5472 = vmatpush3.bf16.msra.mxu1 %v7255_v28  ;;  %v6123_v26 = vld [vmem:[%s6384_s28 + $0x58] sm:$0x3]  ;;  %v4047_v28 = vld [vmem:[%s8109_s1 + $0x1c8] sm:$0xff] }
  0xbb   : > { %4848 = vmatprep.mubr.f32.mxu1 %v6810_v0  ;;  %5192 = vmatprep.mubr.f32.mxu0 %v6849_v24  ;;  %v898_v0 = vrot.slane %v6123_v26, 2  ;;  %v5481_v24 = vpack.c.bf16 %v4045_v29, %v4044_v37  ;;  %v7449_v29 = vld [vmem:[%s6384_s28 + $0x58] sm:$0x3]  ;;  %v4168_v26 = vld [vmem:[%s8109_s1 + $0x410] sm:$0xff] }
  0xbc   : > { %5474 = vmatprep.subr.bf16.mxu1 %v5473_v7 }
  0xbd   : > { %4849 = vmatmul.mubr.f32.gmra.mrb[2].mxu1 %v6889_v33  ;;  %v4046_v33 = vld [vmem:[%s8109_s1 + $0x1c0] sm:$0xff] }
  0xbe   : > { %5193 = vmatmul.mubr.f32.gmra.mrb[18].mxu0 %v6852_v60  ;;  %4851 = vmatprep.mubr.f32.mxu1 %v6839_v42  ;;  %v6124_v42 = vld [vmem:[%s6384_s28 + $0x70] sm:$0x3] }
  0xbf   : > { %5195 = vmatprep.mubr.f32.mxu0 %v6882_v4  ;;  %5476 = vmatpush3.bf16.msra.mxu1 %v5473_v7  ;;  %v899_v4 = vsel %vm879_vm1, %v6846_v58, %v898_v0  ;;  %v903_v60 = vrot.slane %v6124_v42, 2  ;;  %v923_v7 = vrot.slane %v8245_v19, 2  ;;  %v4169_v0 = vld [vmem:[%s8109_s1 + $0x418] sm:$0xff]  ;;  %v2792_v42 = vrot.slane %v7449_v29, 1  ;;  %v7501_v19 = vld [vmem:[%s6384_s28 + $0xa0] sm:$0x3] }
  0xc0   : > { %5478 = vmatprep.subr.bf16.mxu1 %v5477_v12 }
  0xc1   : > { %4852 = vmatmul.mubr.f32.gmra.mrb[4].mxu1 %v6892_v30  ;;  %v5485_v30 = vpack.c.bf16 %v4047_v28, %v4046_v33  ;;  %v8247_v33 = vld [vmem:[#allocation28_spill] sm:$0xff] }
  0xc2   : > { %5196 = vmatmul.mubr.f32.gmra.mrb[20].mxu0 %v6885_v8  ;;  %4854 = vmatprep.mubr.f32.mxu1 %v6896_v62  ;;  %v4049_v8 = vld [vmem:[%s8109_s1 + $0x1d8] sm:$0xff]  ;;  %v928_v28 = vrot.slane %v8247_v33, 2 }
  0xc3   : > { %5198 = vmatprep.mubr.f32.mxu0 %v6936_v20  ;;  %5480 = vmatpush3.bf16.msra.mxu1 %v5477_v12  ;;  %v904_v20 = vsel %vm879_vm1, %v8241_v56, %v903_v60  ;;  %v5489_v21 = vpack.c.bf16 %v4049_v8, %v4048_v40  ;;  %v8246_v12 = vrot.slane %v6497_v1, 1  ;;  %v7465_v60 = vld [vmem:[%s6384_s28 + $0x70] sm:$0x3]  ;;  %v8248_v40 = vld [vmem:[#allocation5_spill] sm:$0xff] }
  0xc4   : > { %5482 = vmatprep.subr.bf16.mxu1 %v5481_v24  ;;  %v4170_v8 = vld [vmem:[%s8109_s1 + $0x420] sm:$0xff]  ;;  %v929_v2 = vsel %vm879_vm1, %v7076_v45, %v928_v28  ;;  %v8258_v28 = vld [vmem:[#allocation18_spill] sm:$0xff] }
  0xc5   : > { %4855 = vmatmul.mubr.f32.gmra.mrb[6].mxu1 %v899_v4  ;;  %v2786_v37 = vsel %vm299_vm0, %v8246_v12, %v2785_v36  ;;  %v2788_v4 = vsel %vm299_vm0, %v2785_v36, %v2787_v39  ;;  %v8254_v36 = vld [vmem:[#allocation15_spill] sm:$0xff]  ;;  %v4174_v39 = vld [vmem:[%s8109_s1 + $0x440] sm:$0xff]  ;;  %v4175_v12 = vld [vmem:[%s8109_s1 + $0x448] sm:$0xff] }
  0xc6   : > { %5199 = vmatmul.mubr.f32.gmra.mrb[22].mxu0 %v6939_v51  ;;  %4857 = vmatprep.mubr.f32.mxu1 %v6929_v54  ;;  %v4051_v51 = vld [vmem:[%s8109_s1 + $0x1e8] sm:$0xff] }
  0xc7   : > { %5201 = vmatprep.mubr.f32.mxu0 %v6975_v10  ;;  %5484 = vmatpush3.bf16.msra.mxu1 %v5481_v24  ;;  %v6126_v10 = vld [vmem:[%s6384_s28 + $0xa0] sm:$0x3]  ;;  %v5493_v6 = vpack.c.bf16 %v4051_v51, %v4050_v25  ;;  %v924_v24 = vsel %vm879_vm1, %v7050_v13, %v923_v7  ;;  %v8250_v25 = vld [vmem:[#allocation14_spill] sm:$0xff] }
  0xc8   : > { %5486 = vmatprep.subr.bf16.mxu1 %v5485_v30  ;;  %v913_v46 = vrot.slane %v6126_v10, 2  ;;  %v8251_v51 = vld [vmem:[#allocation13_spill] sm:$0xff]  ;;  %v2797_v10 = vrot.slane %v7465_v60, 1 }
  0xc9   : > { %4858 = vmatmul.mubr.f32.gmra.mrb[8].mxu1 %v904_v20  ;;  %v4171_v20 = vld [vmem:[%s8109_s1 + $0x428] sm:$0xff] }
  0xca   : > { %5202 = vmatmul.mubr.f32.gmra.mrb[24].mxu0 %v6978_v18  ;;  %4860 = vmatprep.mubr.f32.mxu1 %v8242_v22  ;;  %v4053_v18 = vld [vmem:[%s8109_s1 + $0x1f8] sm:$0xff] }
  0xcb   : > { %5204 = vmatprep.mubr.f32.mxu0 %v7014_v48  ;;  %5488 = vmatpush3.bf16.msra.mxu1 %v5485_v30  ;;  %v914_v48 = vsel %vm879_vm1, %v6972_v5, %v913_v46  ;;  %v5633_v30 = vpack.c.bf16 %v4169_v0, %v4168_v26  ;;  %v7484_v46 = vld [vmem:[%s6384_s28 + $0x88] sm:$0x3]  ;;  %v8256_v26 = vld [vmem:[#allocation51_spill] sm:$0xff] }
  0xcc   : > { %5490 = vmatprep.subr.bf16.mxu1 %v5489_v21 }
  0xcd   : > { %4861 = vmatmul.mubr.f32.gmra.mrb[10].mxu1 %v909_v53  ;;  %v2793_v53 = vsel %vm299_vm0, %v8251_v51, %v2792_v42 }
  0xce   : > { %5205 = vmatmul.mubr.f32.gmra.mrb[26].mxu0 %v7017_v17  ;;  %4863 = vmatprep.mubr.f32.mxu1 %v7007_v35  ;;  %v5497_v17 = vpack.c.bf16 %v4053_v18, %v4052_v32  ;;  %v4172_v32 = vld [vmem:[%s8109_s1 + $0x430] sm:$0xff] }
  0xcf   : > { %5207 = vmatprep.mubr.f32.mxu0 %v7204_v49  ;;  %5492 = vmatpush3.bf16.msra.mxu1 %v5489_v21  ;;  %v933_v21 = vrot.slane %v8249_v57, 2  ;;  %v4177_v57 = vld [vmem:[%s8109_s1 + $0x458] sm:$0xff] }
  0xd0   : > { %5494 = vmatprep.subr.bf16.mxu1 %v5493_v6 }
  0xd1   : > { %4864 = vmatmul.mubr.f32.gmra.mrb[12].mxu1 %v914_v48  ;;  %v934_v18 = vsel %vm879_vm1, %v7097_v3, %v933_v21  ;;  %v8252_v48 = vld [vmem:[#allocation33_spill] sm:$0xff]  ;;  %v8260_v21 = vld [vmem:[#allocation54_spill] sm:$0xff] }
  0xd2   : > { %5208 = vmatmul.mubr.f32.gmra.mrb[28].mxu0 %v7208_v16  ;;  %4866 = vmatprep.mubr.f32.mxu1 %v7046_v52  ;;  %v938_v55 = vrot.slane %v8252_v48, 2  ;;  %v7535_v48 = vld [vmem:[%s6384_s28 + $0xd0] sm:$0x3] }
  0xd3   : > { %5210 = vmatprep.mubr.f32.mxu0 %v7429_v31  ;;  %5496 = vmatpush3.bf16.msra.mxu1 %v5493_v6  ;;  %v5637_v6 = vpack.c.bf16 %v4171_v20, %v4170_v8  ;;  %v7518_v8 = vld [vmem:[%s6384_s28 + $0xb8] sm:$0x3]  ;;  %v5645_v20 = vpack.c.bf16 %v4175_v12, %v4174_v39 }
  0xd4   : > { %5498 = vmatprep.subr.bf16.mxu1 %v5497_v17  ;;  %v939_v0 = vsel %vm879_vm1, %v8256_v26, %v938_v55 }
  0xd5   : > { %4867 = vmatmul.mubr.f32.gmra.mrb[14].mxu1 %v919_v38  ;;  %v2802_v38 = vrot.slane %v7484_v46, 1 }
  0xd6   : > { %5211 = vmatmul.mubr.f32.gmra.mrb[30].mxu0 %v7442_v15  ;;  %4869 = vmatprep.mubr.f32.mxu1 %v7072_v44 }
  0xd7   : > { %5245 = vmatprep.mubr.f32.mxu0 %v2786_v37  ;;  %5500 = vmatpush3.bf16.msra.mxu1 %v5497_v17  ;;  %v2798_v17 = vsel %vm299_vm0, %v8254_v36, %v2797_v10  ;;  %v8255_v37 = vld [vmem:[#allocation52_spill] sm:$0xff]  ;;  %v4179_v36 = vld [vmem:[%s8109_s1 + $0x468] sm:$0xff] }
  0xd8   : > { %5661 = vmatprep.subr.bf16.mxu1 %v8248_v40 }
  0xd9   : > { %4870 = vmatmul.mubr.f32.gmra.mrb[16].mxu1 %v924_v24  ;;  %v8257_v24 = vld [vmem:[#allocation38_spill] sm:$0xff] }
  0xda   : > { %5246 = vmatmul.mubr.f32.vlgmr.msra.gmra.mrb[0].mxu0 %v2788_v4  ;;  %4872 = vmatprep.mubr.f32.mxu1 %v7093_v27  ;;  %v943_v33 = vrot.slane %v8257_v24, 2  ;;  %v8259_v4 = vld [vmem:[#allocation17_spill] sm:$0xff] }
  0xdb   : > { %5632 = vmatpush3.bf16.msra.mxu0 %v7345_v14  ;;  %5248 = vmatprep.mubr.f32.mxu0 %v8250_v25  ;;  %v4173_v14 = vld [vmem:[%s8109_s1 + $0x438] sm:$0xff]  ;;  %v2803_v42 = vsel %vm299_vm0, %v8259_v4, %v2802_v38  ;;  %v8261_v25 = vld [vmem:[#allocation53_spill] sm:$0xff]  ;;  %v8266_v38 = vld [vmem:[#allocation55_spill] sm:$0xff] }
  0xdc   : > { %5634 = vmatprep.subr.bf16.mxu0 %v5633_v30  ;;  %v5641_v7 = vpack.c.bf16 %v4173_v14, %v4172_v32  ;;  %v944_v51 = vsel %vm879_vm1, %v8261_v25, %v943_v33  ;;  %v8264_v32 = vld [vmem:[#allocation19_spill] sm:$0xff]  ;;  %v8269_v24 = vld [vmem:[#allocation21_spill] sm:$0xff]  ;;  %v7552_v4 = vld [vmem:[%s6384_s28 + $0xe8] sm:$0x3] }
  0xdd   : > { %4873 = vmatmul.mubr.f32.gmra.mrb[18].mxu1 %v929_v2  ;;  %v4176_v2 = vld [vmem:[%s8109_s1 + $0x450] sm:$0xff] }
  0xde   : > { %5249 = vmatmul.mubr.f32.gmra.mrb[2].mxu0 %v2793_v53  ;;  %4875 = vmatprep.mubr.f32.mxu1 %v7114_v23  ;;  %v8262_v53 = vld [vmem:[#allocation42_spill] sm:$0xff]  ;;  %v5649_v55 = vpack.c.bf16 %v4177_v57, %v4176_v2  ;;  %v4181_v2 = vld [vmem:[%s8109_s1 + $0x478] sm:$0xff] }
  0xdf   : > { %5251 = vmatprep.mubr.f32.mxu0 %v8253_v11  ;;  %5636 = vmatpush3.bf16.msra.mxu0 %v5633_v30  ;;  %v2807_v30 = vrot.slane %v7501_v19, 1  ;;  %v948_v10 = vrot.slane %v8262_v53, 2  ;;  %v4178_v11 = vld [vmem:[%s8109_s1 + $0x460] sm:$0xff]  ;;  %v8271_v53 = vld [vmem:[#allocation26_spill] sm:$0xff] }
  0xe0   : > { %5638 = vmatprep.subr.bf16.mxu0 %v5637_v6 }
  0xe1   : > { %4876 = vmatmul.mubr.f32.gmra.mrb[20].mxu1 %v934_v18  ;;  %v2808_v14 = vsel %vm299_vm0, %v8264_v32, %v2807_v30  ;;  %v2812_v18 = vrot.slane %v7518_v8, 1  ;;  %v949_v39 = vsel %vm879_vm1, %v8266_v38, %v948_v10  ;;  %v4180_v30 = vld [vmem:[%s8109_s1 + $0x470] sm:$0xff]  ;;  %v8272_v10 = vld [vmem:[#allocation24_spill] sm:$0xff]  ;;  %v2822_v32 = vrot.slane %v7552_v4, 1 }
  0xe2   : > { %5252 = vmatmul.mubr.f32.gmra.mrb[4].mxu0 %v2798_v17  ;;  %4878 = vmatprep.mubr.f32.mxu1 %v8255_v37  ;;  %v8265_v17 = vld [vmem:[#allocation56_spill] sm:$0xff] }
  0xe3   : > { %5254 = vmatprep.mubr.f32.mxu0 %v8258_v28  ;;  %5640 = vmatpush3.bf16.msra.mxu0 %v5637_v6  ;;  %v8263_v6 = vld [vmem:[#allocation20_spill] sm:$0xff]  ;;  %v2813_v33 = vsel %vm299_vm0, %v8269_v24, %v2812_v18  ;;  %v2817_v28 = vrot.slane %v7535_v48, 1  ;;  %v5657_v18 = vpack.c.bf16 %v4181_v2, %v4180_v30 }
  0xe4   : > { %5642 = vmatprep.subr.bf16.mxu0 %v5641_v7  ;;  %v6127_v24 = vld [vmem:[%s6384_s28 + $0x18] sm:$0xff] }
  0xe5   : > { %4879 = vmatmul.mubr.f32.gmra.mrb[22].mxu1 %v939_v0  ;;  %v8268_v0 = vld [vmem:[#allocation23_spill] sm:$0xff] }
  0xe6   : > { %5255 = vmatmul.mubr.f32.gmra.mrb[6].mxu0 %v2803_v42  ;;  %4881 = vmatprep.mubr.f32.mxu1 %v8260_v21  ;;  %v5653_v42 = vpack.c.bf16 %v4179_v36, %v4178_v11  ;;  %v8273_v11 = vld [vmem:[#allocation57_spill] sm:$0xff] }
  0xe7   : > { %5257 = vmatprep.mubr.f32.mxu0 %v8263_v6  ;;  %5644 = vmatpush3.bf16.msra.mxu0 %v5641_v7  ;;  %v8267_v7 = vld [vmem:[#allocation46_spill] sm:$0xff]  ;;  %v2818_v6 = vsel %vm299_vm0, %v8272_v10, %v2817_v28  ;;  %v8277_v28 = vld [vmem:[#allocation29_spill] sm:$0xff] }
  0xe8   : > { %5646 = vmatprep.subr.bf16.mxu0 %v5645_v20  ;;  %v953_v12 = vrot.slane %v8267_v7, 2  ;;  %v8275_v7 = vld [vmem:[#allocation27_spill] sm:$0xff] }
  0xe9   : > { %4882 = vmatmul.mubr.f32.gmra.mrb[24].mxu1 %v944_v51 }
  0xea   : > { %5258 = vmatmul.mubr.f32.gmra.mrb[8].mxu0 %v2808_v14  ;;  %4884 = vmatprep.mubr.f32.mxu1 %v8265_v17  ;;  %v954_v57 = vsel %vm879_vm1, %v7180_v43, %v953_v12  ;;  %v7569_v14 = vld [vmem:[%s6384_s28 + $0x100] sm:$0x3]  ;;  %v2823_v12 = vsel %vm299_vm0, %v8275_v7, %v2822_v32  ;;  %v8280_v32 = vld [vmem:[#allocation6_spill] sm:$0xff] }
  0xeb   : > { %5260 = vmatprep.mubr.f32.mxu0 %v8268_v0  ;;  %5648 = vmatpush3.bf16.msra.mxu0 %v5645_v20  ;;  %v8270_v20 = vld [vmem:[#allocation49_spill] sm:$0xff]  ;;  %v7579_v0 = vld [vmem:[%s6384_s28 + $0x118] sm:$0x3] }
  0xec   : > { %5650 = vmatprep.subr.bf16.mxu0 %v5649_v55  ;;  %v958_v51 = vrot.slane %v8270_v20, 2  ;;  %v2832_v2 = vrot.slane %v7579_v0, 1  ;;  %v6129_v20 = vld [vmem:[%s6384_s28 + $0x30] sm:$0xff] }
  0xed   : > { %4885 = vmatmul.mubr.f32.gmra.mrb[26].mxu1 %v949_v39  ;;  %v8274_v39 = vld [vmem:[#allocation30_spill] sm:$0xff] }
  0xee   : > { %5261 = vmatmul.mubr.f32.gmra.mrb[10].mxu0 %v2813_v33  ;;  %4887 = vmatprep.mubr.f32.mxu1 %v7196_v47  ;;  %v959_v36 = vsel %vm879_vm1, %v7200_v59, %v958_v51  ;;  %v8276_v33 = vld [vmem:[#allocation32_spill] sm:$0xff]  ;;  %v8278_v51 = vld [vmem:[#allocation37_spill] sm:$0xff] }
  0xef   : > { %5263 = vmatprep.mubr.f32.mxu0 %v8271_v53  ;;  %5652 = vmatpush3.bf16.msra.mxu0 %v5649_v55  ;;  %v2827_v55 = vrot.slane %v7569_v14, 1  ;;  %v8279_v53 = vld [vmem:[#allocation34_spill] sm:$0xff] }
  0xf0   : > { %5654 = vmatprep.subr.bf16.mxu0 %v5653_v42  ;;  %v2833_v10 = vsel %vm299_vm0, %v8279_v53, %v2832_v2  ;;  %v8285_v2 = vld [vmem:[#allocation41_spill] sm:$0xff]  ;;  %v8286_v53 = vld [vmem:[#allocation8_spill] sm:$0xff] }
  0xf1   : > { %4888 = vmatmul.mubr.f32.gmra.mrb[28].mxu1 %v954_v57  ;;  %v2828_v30 = vsel %vm299_vm0, %v8277_v28, %v2827_v55  ;;  %v7587_v57 = vld [vmem:[%s6384_s28 + $0x130] sm:$0x3]  ;;  %v6132_v28 = vld [vmem:[%s6384_s28 + $0x60] sm:$0xff] }
  0xf2   : > { %5264 = vmatmul.mubr.f32.gmra.mrb[12].mxu0 %v2818_v6  ;;  %4890 = vmatprep.mubr.f32.mxu1 %v8273_v11  ;;  %v2837_v6 = vrot.slane %v7587_v57, 1  ;;  %v8283_v55 = vld [vmem:[#allocation7_spill] sm:$0xff] }
  0xf3   : > { %5266 = vmatprep.mubr.f32.mxu0 %v8274_v39  ;;  %5656 = vmatpush3.bf16.msra.mxu0 %v5653_v42  ;;  %v6128_v42 = vld [vmem:[%s6384_s28 + $0x20] sm:$0xff]  ;;  %v8282_v39 = vld [vmem:[#allocation36_spill] sm:$0xff] }
  0xf4   : > { %5658 = vmatprep.subr.bf16.mxu0 %v5657_v18  ;;  %v2838_v7 = vsel %vm299_vm0, %v8282_v39, %v2837_v6  ;;  %v6134_v6 = vld [vmem:[%s6384_s28 + $0x78] sm:$0xff] }
  0xf5   : > { %4891 = vmatmul.mubr.f32.gmra.mrb[30].mxu1 %v959_v36  ;;  %v8281_v36 = vld [vmem:[#allocation40_spill] sm:$0xff] }
  0xf6   : > { %5267 = vmatmul.mubr.f32.gmra.mrb[14].mxu0 %v2823_v12  ;;  %4925 = vmatprep.mubr.f32.mxu1 %v6127_v24  ;;  %v7609_v24 = vld [vmem:[%s6384_s28 + $0x160] sm:$0x3] }
  0xf7   : > { %5269 = vmatprep.mubr.f32.mxu0 %v8276_v33  ;;  %5660 = vmatpush3.bf16.msra.mxu0 %v5657_v18  ;;  %v7598_v18 = vld [vmem:[%s6384_s28 + $0x148] sm:$0x3]  ;;  %v6131_v33 = vld [vmem:[%s6384_s28 + $0x50] sm:$0xff] }
  0xf8   : > { %v2842_v12 = vrot.slane %v7598_v18, 1 }
  0xf9   : > { %4926 = vmatmul.mubr.f32.vlgmr.msra.gmra.mrb[0].mxu1 %v6128_v42 }
  0xfa   : > { %5270 = vmatmul.mubr.f32.gmra.mrb[16].mxu0 %v2828_v30  ;;  %5669 = vmatpush3.bf16.msra.mxu1 %v8248_v40  ;;  %v6130_v40 = vld [vmem:[%s6384_s28 + $0x48] sm:$0xff]  ;;  %v8284_v30 = vld [vmem:[#allocation44_spill] sm:$0xff]  ;;  %v2843_v42 = vsel %vm299_vm0, %v8285_v2, %v2842_v12  ;;  %v7631_v12 = vrot.slane %v7208_v16, 1 }
  0xfb   : > { %4928 = vmatprep.mubr.f32.mxu1 %v6129_v20  ;;  %5272 = vmatprep.mubr.f32.mxu0 %v8278_v51  ;;  %v2847_v20 = vrot.slane %v7609_v24, 1  ;;  %v7619_v51 = vld [vmem:[%s6384_s28 + $0x178] sm:$0x3]  ;;  %v8291_v2 = vld [vmem:[#allocation50_spill] sm:$0xff] }
  0xfc   : > { %5662 = vmatprep.subr.bf16.mxu1 %v8280_v32  ;;  %v2852_v39 = vrot.slane %v7619_v51, 1  ;;  %8289 = vst [vmem:[#allocation35_spill] sm:$0xff] %v7631_v12 }
  0xfd   : > { %4929 = vmatmul.mubr.f32.gmra.mrb[2].mxu1 %v7275_v9 }
  0xfe   : > { %5273 = vmatmul.mubr.f32.gmra.mrb[18].mxu0 %v2833_v10  ;;  %4931 = vmatprep.mubr.f32.mxu1 %v6130_v40  ;;  %v6133_v10 = vld [vmem:[%s6384_s28 + $0x68] sm:$0xff]  ;;  %v8288_v40 = vld [vmem:[#allocation45_spill] sm:$0xff] }
  0xff   : > { %5275 = vmatprep.mubr.f32.mxu0 %v8281_v36  ;;  %5670 = vmatpush3.bf16.msra.mxu1 %v8280_v32  ;;  %v8287_v32 = vld [vmem:[#allocation47_spill] sm:$0xff]  ;;  %v2848_v36 = vsel %vm299_vm0, %v8288_v40, %v2847_v20  ;;  %v7651_v40 = vld [vmem:[%s6384_s28 + $0x1a8] sm:$0x3] }
 0x100   : > { %5663 = vmatprep.subr.bf16.mxu1 %v8283_v55 }
 0x101   : > { %4932 = vmatmul.mubr.f32.gmra.mrb[4].mxu1 %v6131_v33  ;;  %v8290_v33 = vld [vmem:[#allocation9_spill] sm:$0xff] }
 0x102   : > { %5276 = vmatmul.mubr.f32.gmra.mrb[20].mxu0 %v2838_v7  ;;  %4934 = vmatprep.mubr.f32.mxu1 %v6132_v28  ;;  %v2854_v7 = vrot.slane %v7204_v49, 1  ;;  %v6135_v28 = vld [vmem:[%s6384_s28 + $0x80] sm:$0xff] }
 0x103   : > { %5278 = vmatprep.mubr.f32.mxu0 %v8284_v30  ;;  %5671 = vmatpush3.bf16.msra.mxu1 %v8283_v55  ;;  %v7634_v55 = vld [vmem:[%s6384_s28 + $0x190] sm:$0x3] }
 0x104   : > { %5664 = vmatprep.subr.bf16.mxu1 %v8286_v53  ;;  %v6136_v30 = vld [vmem:[%s6384_s28 + $0x90] sm:$0xff] }
 0x105   : > { %4935 = vmatmul.mubr.f32.gmra.mrb[6].mxu1 %v6133_v10  ;;  %v2859_v10 = vrot.slane %v7429_v31, 1 }
 0x106   : > { %5279 = vmatmul.mubr.f32.gmra.mrb[22].mxu0 %v2843_v42  ;;  %4937 = vmatprep.mubr.f32.mxu1 %v6134_v6  ;;  %v8292_v42 = vld [vmem:[#allocation48_spill] sm:$0xff]  ;;  %v2860_v6 = vrot.slane %v7442_v15, 1 }
 0x107   : > { %5281 = vmatprep.mubr.f32.mxu0 %v8287_v32  ;;  %5672 = vmatpush3.bf16.msra.mxu1 %v8286_v53  ;;  %v2853_v20 = vsel %vm299_vm0, %v8292_v42, %v2852_v39  ;;  %v2857_v53 = vrot.slane %v7634_v55, 1  ;;  %v7648_v32 = vsel %vm299_vm0, %v2854_v7, %v7631_v12  ;;  %v6138_v39 = vld [vmem:[%s6384_s28 + $0xa8] sm:$0xff]  ;;  %v8294_v42 = vld [vmem:[#allocation11_spill] sm:$0xff] }
 0x108   : > { %5665 = vmatprep.subr.bf16.mxu1 %v8290_v33  ;;  %v2861_v7 = vsel %vm299_vm0, %v2859_v10, %v2860_v6  ;;  %v8295_v10 = vrot.slane %v6497_v1, 2  ;;  %v7682_v1 = vld [vmem:[%s6384_s28 + $0xe0] sm:$0xff] }
 0x109   : > { %4938 = vmatmul.mubr.f32.gmra.mrb[8].mxu1 %v6135_v28  ;;  %v6137_v28 = vld [vmem:[%s6384_s28 + $0x98] sm:$0xff] }
 0x10a   : > { %5282 = vmatmul.mubr.f32.gmra.mrb[24].mxu0 %v2848_v36  ;;  %4940 = vmatprep.mubr.f32.mxu1 %v6136_v30  ;;  %v8293_v36 = vld [vmem:[#allocation10_spill] sm:$0xff]  ;;  %v2862_v30 = vrot.slane %v7651_v40, 1 }
 0x10b   : > { %5284 = vmatprep.mubr.f32.mxu0 %v8291_v2  ;;  %5673 = vmatpush3.bf16.msra.mxu1 %v8290_v33  ;;  %v2858_v33 = vsel %vm299_vm0, %v7631_v12, %v2857_v53  ;;  %v3171_v2 = vrot.slane %v7275_v9, 2  ;;  %v6141_v12 = vld [vmem:[%s6384_s28 + $0xc8] sm:$0xff] }
 0x10c   : > { %5666 = vmatprep.subr.bf16.mxu1 %v8293_v36  ;;  %v2863_v53 = vsel %vm299_vm0, %v2860_v6, %v2862_v30  ;;  %v3178_v6 = vrot.slane %v7449_v29, 2  ;;  %v3183_v29 = vrot.slane %v7465_v60, 2  ;;  %v7710_v60 = vld [vmem:[%s6384_s28 + $0x120] sm:$0xff] }
 0x10d   : > { %4941 = vmatmul.mubr.f32.gmra.mrb[10].mxu1 %v6137_v28  ;;  %v6140_v28 = vld [vmem:[%s6384_s28 + $0xc0] sm:$0xff]  ;;  %v3172_v9 = vsel %vm879_vm1, %v8295_v10, %v3171_v2  ;;  %v7756_v10 = vld [vmem:[%s6384_s28 + $0x170] sm:$0xff] }
 0x10e   : > { %5285 = vmatmul.mubr.f32.gmra.mrb[26].mxu0 %v2853_v20  ;;  %4943 = vmatprep.mubr.f32.mxu1 %v6138_v39  ;;  %v6139_v20 = vld [vmem:[%s6384_s28 + $0xb0] sm:$0xff]  ;;  %v3173_v39 = vrot.slane %v7433_v63, 2  ;;  %v3179_v30 = vsel %vm879_vm1, %v6846_v58, %v3178_v6  ;;  %v3188_v58 = vrot.slane %v7484_v46, 2  ;;  %v7722_v46 = vld [vmem:[%s6384_s28 + $0x138] sm:$0xff] }
 0x10f   : > { %5287 = vmatprep.mubr.f32.mxu0 %v7648_v32  ;;  %5674 = vmatpush3.bf16.msra.mxu1 %v8293_v36  ;;  %v8296_v36 = vld [vmem:[#allocation12_spill] sm:$0xff] }
 0x110   : > { %5667 = vmatprep.subr.bf16.mxu1 %v8294_v42  ;;  %v3174_v63 = vsel %vm879_vm1, %v3171_v2, %v3173_v39  ;;  %v7698_v2 = vld [vmem:[%s6384_s28 + $0x108] sm:$0xff] }
 0x111   : > { %4944 = vmatmul.mubr.f32.gmra.mrb[12].mxu1 %v6139_v20  ;;  %v7718_v20 = vld [vmem:[%s6384_s28 + $0x128] sm:$0xff] }
 0x112   : > { %5288 = vmatmul.mubr.f32.gmra.mrb[28].mxu0 %v2858_v33  ;;  %4946 = vmatprep.mubr.f32.mxu1 %v6140_v28  ;;  %v7675_v33 = vld [vmem:[%s6384_s28 + $0xd8] sm:$0xff]  ;;  %v7730_v28 = vld [vmem:[%s6384_s28 + $0x140] sm:$0xff] }
 0x113   : > { %5290 = vmatprep.mubr.f32.mxu0 %v2861_v7  ;;  %5675 = vmatpush3.bf16.msra.mxu1 %v8294_v42  ;;  %v7694_v7 = vld [vmem:[%s6384_s28 + $0xf8] sm:$0xff]  ;;  %v7706_v42 = vld [vmem:[%s6384_s28 + $0x110] sm:$0xff] }
 0x114   : > { %5668 = vmatprep.subr.bf16.mxu1 %v8296_v36 }
 0x115   : > { %4947 = vmatmul.mubr.f32.gmra.mrb[14].mxu1 %v6141_v12  ;;  %v7686_v12 = vld [vmem:[%s6384_s28 + $0xf0] sm:$0xff] }
 0x116   : > { %5291 = vmatmul.mubr.f32.gmra.mrb[30].mxu0 %v2863_v53  ;;  %4949 = vmatprep.mubr.f32.mxu1 %v7675_v33  ;;  %v7742_v53 = vld [vmem:[%s6384_s28 + $0x158] sm:$0xff] }
 0x117   : > { %5325 = vmatprep.mubr.f32.mxu0 %v3172_v9  ;;  %5676 = vmatpush3.bf16.msra.mxu1 %v8296_v36  ;;  %v6156_v9 = vld [vmem:[%s6384_s28 + $0xe8] sm:$0x3] }
 0x118   : > { %v1682_v36 = vrot.slane %v6156_v9, 1 }
 0x119   : > { %4950 = vmatmul.mubr.f32.gmra.mrb[16].mxu1 %v7682_v1 }
 0x11a   : > { %5326 = vmatmul.mubr.f32.vlgmr.msra.gmra.mrb[0].mxu0 %v3174_v63  ;;  %4952 = vmatprep.mubr.f32.mxu1 %v7686_v12  ;;  %v1685_v63 = vrot.slane %v7694_v7, 1 }
 0x11b   : > { %5328 = vmatprep.mubr.f32.mxu0 %v6896_v62  ;;  %v3184_v62 = vsel %vm879_vm1, %v8241_v56, %v3183_v29  ;;  %v3193_v56 = vrot.slane %v7501_v19, 2  ;;  %v7734_v19 = vld [vmem:[%s6384_s28 + $0x150] sm:$0xff]  ;;  %v6158_v29 = vld [vmem:[%s6384_s28 + $0x118] sm:$0x3] }
 0x11d   : > { %4953 = vmatmul.mubr.f32.gmra.mrb[18].mxu1 %v7694_v7  ;;  %v3223_v7 = vrot.slane %v7587_v57, 2 }
 0x11e   : > { %5329 = vmatmul.mubr.f32.gmra.mrb[2].mxu0 %v3179_v30  ;;  %4955 = vmatprep.mubr.f32.mxu1 %v7698_v2 }
 0x11f   : > { %5331 = vmatprep.mubr.f32.mxu0 %v6929_v54  ;;  %v3189_v54 = vsel %vm879_vm1, %v8243_v41, %v3188_v58  ;;  %v3198_v41 = vrot.slane %v7518_v8, 2  ;;  %v7746_v8 = vld [vmem:[%s6384_s28 + $0x168] sm:$0xff]  ;;  %v3224_v57 = vsel %vm879_vm1, %v8261_v25, %v3223_v7 }
 0x121   : > { %4956 = vmatmul.mubr.f32.gmra.mrb[20].mxu1 %v7706_v42 }
 0x122   : > { %5332 = vmatmul.mubr.f32.gmra.mrb[4].mxu0 %v3184_v62  ;;  %4958 = vmatprep.mubr.f32.mxu1 %v7710_v60  ;;  %v1695_v62 = vrot.slane %v7718_v20, 1 }
 0x123   : > { %5334 = vmatprep.mubr.f32.mxu0 %v8242_v22  ;;  %v3194_v22 = vsel %vm879_vm1, %v6972_v5, %v3193_v56  ;;  %v3203_v5 = vrot.slane %v7535_v48, 2  ;;  %v1680_v48 = vrot.slane %v7682_v1, 1  ;;  %v3218_v1 = vrot.slane %v7579_v0, 2 }
 0x124   : > { %v1700_v56 = vrot.slane %v7730_v28, 1 }
 0x125   : > { %4959 = vmatmul.mubr.f32.gmra.mrb[22].mxu1 %v7718_v20  ;;  %v3204_v39 = vsel %vm879_vm1, %v7050_v13, %v3203_v5  ;;  %v6161_v5 = vld [vmem:[%s6384_s28 + $0x160] sm:$0x3] }
 0x126   : > { %5335 = vmatmul.mubr.f32.gmra.mrb[6].mxu0 %v3189_v54  ;;  %4961 = vmatprep.mubr.f32.mxu1 %v7722_v46  ;;  %v3228_v54 = vrot.slane %v7598_v18, 2 }
 0x127   : > { %5337 = vmatprep.mubr.f32.mxu0 %v7007_v35  ;;  %v3199_v35 = vsel %vm879_vm1, %v7011_v34, %v3198_v41  ;;  %v1679_v34 = vrot.slane %v7675_v33, 1  ;;  %v1684_v33 = vrot.slane %v7686_v12, 1  ;;  %v1689_v12 = vrot.slane %v7698_v2, 1 }
 0x128   : > { %v1694_v2 = vrot.slane %v7710_v60, 1  ;;  %v1699_v60 = vrot.slane %v7722_v46, 1  ;;  %v3233_v41 = vrot.slane %v7609_v24, 2  ;;  %v1704_v46 = vrot.slane %v7734_v19, 1 }
 0x129   : > { %4962 = vmatmul.mubr.f32.gmra.mrb[24].mxu1 %v7730_v28  ;;  %v1705_v28 = vrot.slane %v7742_v53, 1 }
 0x12a   : > { %5338 = vmatmul.mubr.f32.gmra.mrb[8].mxu0 %v3194_v22  ;;  %4964 = vmatprep.mubr.f32.mxu1 %v7734_v19  ;;  %v6160_v22 = vld [vmem:[%s6384_s28 + $0x148] sm:$0x3]  ;;  %v1701_v18 = vsel %vm299_vm0, %v1699_v60, %v1700_v56  ;;  %v3234_v24 = vsel %vm879_vm1, %v7180_v43, %v3233_v41  ;;  %v1709_v19 = vrot.slane %v7746_v8, 1 }
 0x12b   : > { %5340 = vmatprep.mubr.f32.mxu0 %v7046_v52  ;;  %v3208_v52 = vrot.slane %v7552_v4, 2  ;;  %v1681_v4 = vsel %vm299_vm0, %v1679_v34, %v1680_v48  ;;  %v1702_v25 = vrot.slane %v6160_v22, 1  ;;  %v6162_v34 = vld [vmem:[%s6384_s28 + $0x178] sm:$0x3] }
 0x12c   : > { %v1712_v43 = vrot.slane %v6162_v34, 1 }
 0x12d   : > { %4965 = vmatmul.mubr.f32.gmra.mrb[26].mxu1 %v7742_v53  ;;  %v3209_v13 = vsel %vm879_vm1, %v7076_v45, %v3208_v52  ;;  %v1686_v45 = vsel %vm299_vm0, %v1684_v33, %v1685_v63  ;;  %v1710_v53 = vrot.slane %v7756_v10, 1 }
 0x12e   : > { %5341 = vmatmul.mubr.f32.gmra.mrb[10].mxu0 %v3199_v35  ;;  %4967 = vmatprep.mubr.f32.mxu1 %v7746_v8  ;;  %v1703_v35 = vsel %vm299_vm0, %v1700_v56, %v1702_v25  ;;  %v3245_v8 = vrot.slane %v7429_v31, 2  ;;  %v8297_v31 = vld [vmem:[#allocation35_spill] sm:$0xff] }
 0x12f   : > { %5343 = vmatprep.mubr.f32.mxu0 %v7072_v44  ;;  %v3213_v44 = vrot.slane %v7569_v14, 2  ;;  %v1713_v9 = vsel %vm299_vm0, %v1710_v53, %v1712_v43 }
 0x131   : > { %4968 = vmatmul.mubr.f32.gmra.mrb[28].mxu1 %v7756_v10  ;;  %v3214_v14 = vsel %vm879_vm1, %v7097_v3, %v3213_v44  ;;  %v1692_v3 = vrot.slane %v6158_v29, 1  ;;  %v3246_v10 = vrot.slane %v7442_v15, 2 }
 0x132   : > { %5344 = vmatmul.mubr.f32.gmra.mrb[12].mxu0 %v3204_v39  ;;  %4970 = vmatprep.mubr.f32.mxu1 %v7204_v49  ;;  %v1683_v49 = vsel %vm299_vm0, %v1680_v48, %v1682_v36  ;;  %v3238_v39 = vrot.slane %v7619_v51, 2  ;;  %v1711_v48 = vsel %vm299_vm0, %v1709_v19, %v1710_v53  ;;  %v3243_v51 = vrot.slane %v7634_v55, 2  ;;  %v6163_v36 = vld [vmem:[%s6384_s28 + $0x190] sm:$0x3] }
 0x133   : > { %5346 = vmatprep.mubr.f32.mxu0 %v7093_v27  ;;  %v6157_v27 = vld [vmem:[%s6384_s28 + $0x100] sm:$0x3]  ;;  %v1717_v44 = vrot.slane %v6163_v36, 1  ;;  %v3247_v55 = vsel %vm879_vm1, %v3245_v8, %v3246_v10 }
 0x134   : > { %v1687_v6 = vrot.slane %v6157_v27, 1 }
 0x135   : > { %4971 = vmatmul.mubr.f32.gmra.mrb[30].mxu1 %v7208_v16  ;;  %v1690_v16 = vrot.slane %v7706_v42, 1  ;;  %v6159_v42 = vld [vmem:[%s6384_s28 + $0x130] sm:$0x3]  ;;  %v1718_v15 = vsel %vm299_vm0, %v8297_v31, %v1717_v44 }
 0x136   : > { %5347 = vmatmul.mubr.f32.gmra.mrb[14].mxu0 %v3209_v13  ;;  %5029 = vmatprep.mubr.f32.mxu1 %v1681_v4  ;;  %v1688_v30 = vsel %vm299_vm0, %v1685_v63, %v1687_v6 }
 0x137   : > { %5349 = vmatprep.mubr.f32.mxu0 %v7114_v23  ;;  %v3219_v23 = vsel %vm879_vm1, %v8256_v26, %v3218_v1  ;;  %v1691_v0 = vsel %vm299_vm0, %v1689_v12, %v1690_v16  ;;  %v1693_v58 = vsel %vm299_vm0, %v1690_v16, %v1692_v3  ;;  %v1696_v26 = vsel %vm299_vm0, %v1694_v2, %v1695_v62  ;;  %v7847_v3 = vld [vmem:[%s8110_s2] ss:$0 sm:$0xff] }
 0x139   : > { %5030 = vmatmul.mubr.f32.vlgmr.msra.gmra.mrb[16].mxu1 %v1683_v49 }
 0x13a   : > { %5350 = vmatmul.mubr.f32.gmra.mrb[16].mxu0 %v3214_v14  ;;  %5032 = vmatprep.mubr.f32.mxu1 %v1686_v45 }
 0x13b   : > { %5352 = vmatprep.mubr.f32.mxu0 %v8255_v37  ;;  %v1697_v37 = vrot.slane %v6159_v42, 1 }
 0x13d   : > { %5033 = vmatmul.mubr.f32.gmra.mrb[18].mxu1 %v1688_v30  ;;  %v1698_v20 = vsel %vm299_vm0, %v1695_v62, %v1697_v37 }
 0x13e   : > { %5353 = vmatmul.mubr.f32.gmra.mrb[18].mxu0 %v3219_v23  ;;  %5035 = vmatprep.mubr.f32.mxu1 %v1691_v0 }
 0x13f   : > { %5355 = vmatprep.mubr.f32.mxu0 %v8260_v21  ;;  %v3229_v21 = vsel %vm879_vm1, %v8266_v38, %v3228_v54  ;;  %v1706_v38 = vsel %vm299_vm0, %v1704_v46, %v1705_v28 }
 0x141   : > { %5036 = vmatmul.mubr.f32.gmra.mrb[20].mxu1 %v1693_v58 }
 0x142   : > { %5356 = vmatmul.mubr.f32.gmra.mrb[20].mxu0 %v3224_v57  ;;  %5038 = vmatprep.mubr.f32.mxu1 %v1696_v26 }
 0x143   : > { %5358 = vmatprep.mubr.f32.mxu0 %v8265_v17  ;;  %v1707_v17 = vrot.slane %v6161_v5, 1 }
 0x145   : > { %5039 = vmatmul.mubr.f32.gmra.mrb[22].mxu1 %v1698_v20  ;;  %v1708_v52 = vsel %vm299_vm0, %v1705_v28, %v1707_v17 }
 0x146   : > { %5359 = vmatmul.mubr.f32.gmra.mrb[22].mxu0 %v3229_v21  ;;  %5041 = vmatprep.mubr.f32.mxu1 %v1701_v18 }
 0x147   : > { %5361 = vmatprep.mubr.f32.mxu0 %v7196_v47  ;;  %v3239_v47 = vsel %vm879_vm1, %v7200_v59, %v3238_v39  ;;  %v3244_v59 = vsel %vm879_vm1, %v7226_v61, %v3243_v51 }
 0x149   : > { %5042 = vmatmul.mubr.f32.gmra.mrb[24].mxu1 %v1703_v35 }
 0x14a   : > { %5362 = vmatmul.mubr.f32.gmra.mrb[24].mxu0 %v3234_v24  ;;  %5044 = vmatprep.mubr.f32.mxu1 %v1706_v38 }
 0x14b   : > { %5364 = vmatprep.mubr.f32.mxu0 %v8273_v11  ;;  %v3248_v11 = vrot.slane %v7651_v40, 2 }
 0x14d   : > { %5045 = vmatmul.mubr.f32.gmra.mrb[26].mxu1 %v1708_v52  ;;  %v3249_v13 = vsel %vm879_vm1, %v3246_v10, %v3248_v11 }
 0x14e   : > { %5365 = vmatmul.mubr.f32.gmra.mrb[26].mxu0 %v3239_v47  ;;  %5047 = vmatprep.mubr.f32.mxu1 %v1711_v48 }
 0x14f   : > { %5367 = vmatprep.mubr.f32.mxu0 %v7242_v50 }
 0x151   : > { %5048 = vmatmul.mubr.f32.gmra.mrb[28].mxu1 %v1713_v9 }
 0x152   : > { %5368 = vmatmul.mubr.f32.gmra.mrb[28].mxu0 %v3244_v59  ;;  %5050 = vmatprep.mubr.f32.mxu1 %v7648_v32 }
 0x153   : > { %5370 = vmatprep.mubr.f32.mxu0 %v3247_v55 }
 0x155   : > { %5051 = vmatmul.mubr.f32.gmra.mrb[30].mxu1 %v1718_v15 }
 0x156   : > { %5371 = vmatmul.mubr.f32.gmra.mrb[30].mxu0 %v3249_v13 }
 0x1cc   : > { %v4927_v50 = vpop.f32.mrb[0].mxu1 }
 0x1cd   : > { %v1400_v4 = vpop.f32.mrb[1].mxu1 }
 0x1d0   : > { %v4930_v33 = vpop.f32.mrb[2].mxu1 }
 0x1d1   : > { %v1410_v61 = vpop.f32.mrb[3].mxu1 }
 0x1d4   : > { %v4933_v63 = vpop.f32.mrb[4].mxu1 }
 0x1d5   : > { %v1420_v40 = vpop.f32.mrb[5].mxu1 }
 0x1d8   : > { %v4936_v49 = vpop.f32.mrb[6].mxu1 }
 0x1d9   : > { %v1430_v14 = vpop.f32.mrb[7].mxu1 }
 0x1dc   : > { %v4939_v27 = vpop.f32.mrb[8].mxu1 }
 0x1dd   : > { %v1440_v6 = vpop.f32.mrb[9].mxu1 }
 0x1e0   : > { %v4942_v45 = vpop.f32.mrb[10].mxu1 }
 0x1e1   : > { %v7834_v32 = vpop.f32.mrb[11].mxu1 }
 0x1e4   : > { %v7836_v1 = vpop.f32.mrb[12].mxu1 }
 0x1e5   : > { %v7838_v12 = vpop.f32.mrb[13].mxu1 }
 0x1e8   : > { %v7840_v16 = vpop.f32.mrb[14].mxu1 }
 0x1e9   : > { %v7842_v30 = vpop.f32.mrb[15].mxu1 }
 0x1ed   : > { %v5327_v29 = vpop.f32.mrb[0].mxu0 }
 0x1ee   : > { %v5677_v7 = vadd.f32 %v5327_v29, %v4927_v50  ;;  %v3365_v23 = vpop.f32.mrb[1].mxu0 }
 0x1ef   : > { %v5678_v0 = vadd.f32 %v3365_v23, %v1400_v4 }
 0x1f0   : > { %v7850_v2 = vadd.f32 %v5677_v7, %v7847_v3 }
 0x1f1   : > { %v7853_v62 = vadd.f32 %v5678_v0, %v7847_v3  ;;  %v5330_v58 = vpop.f32.mrb[2].mxu0 }
 0x1f2   : > { %v4184_v57 = vmul.f32 -1.442695, %v7850_v2  ;;  %v5679_v42 = vadd.f32 %v5330_v58, %v4930_v33  ;;  %v3375_v37 = vpop.f32.mrb[3].mxu0 }
 0x1f3   : > { %v4183_v26 = vmul.f32 -1.442695, %v7853_v62  ;;  %v5680_v54 = vadd.f32 %v3375_v37, %v1410_v61 }
 0x1f4   : > { %5991 = vpow2.f32 %v4184_v57  ;;  %v7858_v60 = vadd.f32 %v5679_v42, %v7847_v3 }
 0x1f5   : > { %5993 = vpow2.f32 %v4183_v26  ;;  %v7861_v56 = vadd.f32 %v5680_v54, %v7847_v3  ;;  %v5333_v20 = vpop.f32.mrb[4].mxu0 }
 0x1f6   : > { %v4186_v22 = vmul.f32 -1.442695, %v7858_v60  ;;  %v5681_v25 = vadd.f32 %v5333_v20, %v4933_v63  ;;  %v3385_v41 = vpop.f32.mrb[5].mxu0 }
 0x1f7   : > { %v4185_v21 = vmul.f32 -1.442695, %v7861_v56  ;;  %v5682_v18 = vadd.f32 %v3385_v41, %v1420_v40 }
 0x1f8   : > { %5995 = vpow2.f32 %v4186_v22  ;;  %v7866_v46 = vadd.f32 %v5681_v25, %v7847_v3 }
 0x1f9   : > { %5997 = vpow2.f32 %v4185_v21  ;;  %v7869_v28 = vadd.f32 %v5682_v18, %v7847_v3  ;;  %v5336_v35 = vpop.f32.mrb[6].mxu0 }
 0x1fa   : > { %v4188_v24 = vmul.f32 -1.442695, %v7866_v46  ;;  %v5683_v5 = vadd.f32 %v5336_v35, %v4936_v49  ;;  %v3395_v17 = vpop.f32.mrb[7].mxu0 }
 0x1fb   : > { %v4187_v38 = vmul.f32 -1.442695, %v7869_v28  ;;  %v5684_v39 = vadd.f32 %v3395_v17, %v1430_v14 }
 0x1fc   : > { %5999 = vpow2.f32 %v4188_v24  ;;  %v7874_v19 = vadd.f32 %v5683_v5, %v7847_v3 }
 0x1fd   : > { %6001 = vpow2.f32 %v4187_v38  ;;  %v7877_v53 = vadd.f32 %v5684_v39, %v7847_v3  ;;  %v5339_v52 = vpop.f32.mrb[8].mxu0 }
 0x1fe   : > { %v5992_v34 = vpop.eup %5991  ;;  %v4190_v43 = vmul.f32 -1.442695, %v7874_v19  ;;  %v5685_v47 = vadd.f32 %v5339_v52, %v4939_v27  ;;  %v3405_v48 = vpop.f32.mrb[9].mxu0 }
 0x1ff   : > { %v5994_v51 = vpop.eup %5993  ;;  %v3692_v8 = vadd.f32 1.0, %v5992_v34  ;;  %v4189_v10 = vmul.f32 -1.442695, %v7877_v53  ;;  %v5686_v9 = vadd.f32 %v3405_v48, %v1440_v6 }
 0x200   : > { %v3691_v36 = vadd.f32 1.0, %v5994_v51  ;;  %6003 = vpow2.f32 %v4190_v43  ;;  %v7882_v44 = vadd.f32 %v5685_v47, %v7847_v3 }
 0x201   : > { %6005 = vrcp.f32 %v3692_v8  ;;  %v7885_v59 = vadd.f32 %v5686_v9, %v7847_v3  ;;  %v5342_v11 = vpop.f32.mrb[10].mxu0 }
 0x202   : > { %v5996_v55 = vpop.eup %5995  ;;  %6007 = vrcp.f32 %v3691_v36  ;;  %v4192_v31 = vmul.f32 -1.442695, %v7882_v44  ;;  %v5687_v15 = vadd.f32 %v5342_v11, %v4942_v45  ;;  %v3415_v13 = vpop.f32.mrb[11].mxu0 }
 0x203   : > { %v5998_v50 = vpop.eup %5997  ;;  %v3694_v4 = vadd.f32 1.0, %v5996_v55  ;;  %6009 = vpow2.f32 %v4189_v10  ;;  %v4191_v33 = vmul.f32 -1.442695, %v7885_v59  ;;  %v5688_v61 = vadd.f32 %v3415_v13, %v7834_v32 }
 0x204   : > { %v3693_v63 = vadd.f32 1.0, %v5998_v50  ;;  %6011 = vpow2.f32 %v4192_v31  ;;  %v7891_v40 = vadd.f32 %v5687_v15, %v7847_v3 }
 0x205   : > { %6013 = vrcp.f32 %v3694_v4  ;;  %v7895_v49 = vadd.f32 %v5688_v61, %v7847_v3  ;;  %v5345_v14 = vpop.f32.mrb[12].mxu0 }
 0x206   : > { %v6000_v27 = vpop.eup %5999  ;;  %6015 = vrcp.f32 %v3693_v63  ;;  %v4194_v6 = vmul.f32 -1.442695, %v7891_v40  ;;  %v5689_v45 = vadd.f32 %v5345_v14, %v7836_v1  ;;  %v3425_v29 = vpop.f32.mrb[13].mxu0 }
 0x207   : > { %v6002_v32 = vpop.eup %6001  ;;  %v3696_v7 = vadd.f32 1.0, %v6000_v27  ;;  %6017 = vpow2.f32 %v4191_v33  ;;  %v4193_v23 = vmul.f32 -1.442695, %v7895_v49  ;;  %v5690_v0 = vadd.f32 %v3425_v29, %v7838_v12 }
 0x208   : > { %v3695_v58 = vadd.f32 1.0, %v6002_v32  ;;  %6019 = vpow2.f32 %v4194_v6  ;;  %v7904_v57 = vadd.f32 %v5689_v45, %v7847_v3 }
 0x209   : > { %6021 = vrcp.f32 %v3696_v7  ;;  %v7907_v42 = vadd.f32 %v5690_v0, %v7847_v3  ;;  %v5348_v1 = vpop.f32.mrb[14].mxu0 }
 0x20a   : > { %v6004_v37 = vpop.eup %6003  ;;  %6023 = vrcp.f32 %v3695_v58  ;;  %v4196_v26 = vmul.f32 -1.442695, %v7904_v57  ;;  %v5691_v54 = vadd.f32 %v5348_v1, %v7840_v16  ;;  %v3435_v20 = vpop.f32.mrb[15].mxu0 }
 0x20b   : > { %v6006_v12 = vpop.eup %6005  ;;  %v3698_v22 = vadd.f32 1.0, %v6004_v37  ;;  %6025 = vpow2.f32 %v4193_v23  ;;  %v4195_v25 = vmul.f32 -1.442695, %v7907_v42  ;;  %v5692_v41 = vadd.f32 %v3435_v20, %v7842_v30 }
 0x20c   : > { %v6008_v21 = vpop.eup %6007  ;;  %v3788_v18 = vmul.f32 %v6006_v12, %v7850_v2  ;;  %6027 = vpow2.f32 %v4196_v26  ;;  %v7915_v35 = vadd.f32 %v5691_v54, %v7847_v3  ;;  %v5031_v24 = vpop.f32.mrb[16].mxu1 }
 0x20d   : > { %v6010_v5 = vpop.eup %6009  ;;  %v3787_v17 = vmul.f32 %v6008_v21, %v7853_v62  ;;  %6029 = vrcp.f32 %v3698_v22  ;;  %v7919_v16 = vadd.f32 %v5692_v41, %v7847_v3  ;;  %v5351_v38 = vpop.f32.mrb[16].mxu0 }
 0x20e   : > { %v1914_v39 = vpop.f32.mrb[17].mxu1  ;;  %v6012_v52 = vpop.eup %6011  ;;  %3820 = vst [vmem:[%s7921_s5 + $0x8] sm:$0xff] %v3788_v18  ;;  %v3697_v30 = vadd.f32 1.0, %v6010_v5  ;;  %6031 = vpow2.f32 %v4195_v25  ;;  %v4198_v2 = vmul.f32 -1.442695, %v7915_v35  ;;  %v5693_v34 = vadd.f32 %v5351_v38, %v5031_v24 }
 0x20f   : > { %v3445_v43 = vpop.f32.mrb[17].mxu0  ;;  %v6014_v47 = vpop.eup %6013  ;;  %3819 = vst [vmem:[%s7921_s5] sm:$0xff] %v3787_v17  ;;  %v3700_v62 = vadd.f32 1.0, %v6012_v52  ;;  %v4197_v48 = vmul.f32 -1.442695, %v7919_v16 }
 0x210   : > { %v5694_v51 = vadd.f32 %v3445_v43, %v1914_v39  ;;  %v6016_v8 = vpop.eup %6015  ;;  %v3790_v10 = vmul.f32 %v6014_v47, %v7858_v60  ;;  %6033 = vrcp.f32 %v3697_v30  ;;  %v7929_v9 = vadd.f32 %v5693_v34, %v7847_v3  ;;  %v5034_v36 = vpop.f32.mrb[18].mxu1 }
 0x211   : > { %v6018_v11 = vpop.eup %6017  ;;  %v3789_v55 = vmul.f32 %v6016_v8, %v7861_v56  ;;  %6035 = vrcp.f32 %v3700_v62  ;;  %v5354_v15 = vpop.f32.mrb[18].mxu0 }
 0x212   : > { %v7933_v31 = vadd.f32 %v5694_v51, %v7847_v3  ;;  %v1924_v13 = vpop.f32.mrb[19].mxu1  ;;  %v6020_v50 = vpop.eup %6019  ;;  %3822 = vst [vmem:[%s7921_s5 + $0x18] sm:$0xff] %v3790_v10  ;;  %v3699_v4 = vadd.f32 1.0, %v6018_v11  ;;  %6037 = vpow2.f32 %v4198_v2  ;;  %v4200_v60 = vmul.f32 -1.442695, %v7929_v9 }
 0x213   : > { %v5695_v33 = vadd.f32 %v5354_v15, %v5034_v36  ;;  %v3455_v61 = vpop.f32.mrb[19].mxu0  ;;  %v6022_v63 = vpop.eup %6021  ;;  %3821 = vst [vmem:[%s7921_s5 + $0x10] sm:$0xff] %v3789_v55  ;;  %v3702_v14 = vadd.f32 1.0, %v6020_v50  ;;  %6039 = vpow2.f32 %v4197_v48 }
 0x214   : > { %v4199_v56 = vmul.f32 -1.442695, %v7933_v31  ;;  %v5696_v27 = vadd.f32 %v3455_v61, %v1924_v13  ;;  %v6024_v6 = vpop.eup %6023  ;;  %v3792_v45 = vmul.f32 %v6022_v63, %v7866_v46  ;;  %6041 = vrcp.f32 %v3699_v4  ;;  %v5037_v32 = vpop.f32.mrb[20].mxu1 }
 0x215   : > { %v7941_v29 = vadd.f32 %v5695_v33, %v7847_v3  ;;  %v6026_v7 = vpop.eup %6025  ;;  %v3791_v23 = vmul.f32 %v6024_v6, %v7869_v28  ;;  %6043 = vrcp.f32 %v3702_v14  ;;  %v5357_v58 = vpop.f32.mrb[20].mxu0 }
 0x216   : > { %v7945_v0 = vadd.f32 %v5696_v27, %v7847_v3  ;;  %v1934_v1 = vpop.f32.mrb[21].mxu1  ;;  %v6028_v37 = vpop.eup %6027  ;;  %3824 = vst [vmem:[%s7921_s5 + $0x28] sm:$0xff] %v3792_v45  ;;  %v3701_v26 = vadd.f32 1.0, %v6026_v7  ;;  %6045 = vpow2.f32 %v4200_v60  ;;  %v5697_v54 = vadd.f32 %v5357_v58, %v5037_v32 }
 0x217   : > { %v4202_v46 = vmul.f32 -1.442695, %v7941_v29  ;;  %v3465_v20 = vpop.f32.mrb[21].mxu0  ;;  %v6030_v12 = vpop.eup %6029  ;;  %3823 = vst [vmem:[%s7921_s5 + $0x20] sm:$0xff] %v3791_v23  ;;  %v3704_v22 = vadd.f32 1.0, %v6028_v37  ;;  %6047 = vpow2.f32 %v4199_v56 }
 0x218   : > { %v5698_v28 = vadd.f32 %v3465_v20, %v1934_v1  ;;  %v6032_v25 = vpop.eup %6031  ;;  %v3794_v41 = vmul.f32 %v6030_v12, %v7874_v19  ;;  %6049 = vrcp.f32 %v3701_v26  ;;  %v4201_v21 = vmul.f32 -1.442695, %v7945_v0  ;;  %v5040_v24 = vpop.f32.mrb[22].mxu1 }
 0x219   : > { %v7953_v18 = vadd.f32 %v5697_v54, %v7847_v3  ;;  %6051 = vrcp.f32 %v3704_v22  ;;  %v3703_v5 = vadd.f32 1.0, %v6032_v25  ;;  %v5360_v38 = vpop.f32.mrb[22].mxu0  ;;  %v1944_v39 = vpop.f32.mrb[23].mxu1 }
 0x21a   : > { %v7956_v17 = vadd.f32 %v5698_v28, %v7847_v3  ;;  %v6034_v52 = vpop.eup %6033  ;;  %3826 = vst [vmem:[%s7921_s5 + $0x38] sm:$0xff] %v3794_v41  ;;  %6053 = vpow2.f32 %v4202_v46  ;;  %v5699_v30 = vadd.f32 %v5360_v38, %v5040_v24  ;;  %v3475_v2 = vpop.f32.mrb[23].mxu0 }
 0x21b   : > { %v4204_v19 = vmul.f32 -1.442695, %v7953_v18  ;;  %v6036_v34 = vpop.eup %6035  ;;  %v3793_v43 = vmul.f32 %v6034_v52, %v7877_v53  ;;  %6055 = vrcp.f32 %v3703_v5  ;;  %v5700_v62 = vadd.f32 %v3475_v2, %v1944_v39 }
 0x21c   : > { %v4203_v47 = vmul.f32 -1.442695, %v7956_v17  ;;  %v6038_v48 = vpop.eup %6037  ;;  %v3796_v51 = vmul.f32 %v6036_v34, %v7882_v44  ;;  %6057 = vpow2.f32 %v4201_v21  ;;  %v7964_v8 = vadd.f32 %v5699_v30, %v7847_v3  ;;  %v5043_v10 = vpop.f32.mrb[24].mxu1 }
 0x21d   : > { %v6040_v36 = vpop.eup %6039  ;;  %3825 = vst [vmem:[%s7921_s5 + $0x30] sm:$0xff] %v3793_v43  ;;  %v3706_v11 = vadd.f32 1.0, %v6038_v48  ;;  %6059 = vpow2.f32 %v4204_v19  ;;  %v7968_v55 = vadd.f32 %v5700_v62, %v7847_v3  ;;  %v5363_v53 = vpop.f32.mrb[24].mxu0 }
 0x21e   : > { %v1954_v15 = vpop.f32.mrb[25].mxu1  ;;  %v6042_v13 = vpop.eup %6041  ;;  %3828 = vst [vmem:[%s7921_s5 + $0x48] sm:$0xff] %v3796_v51  ;;  %v3705_v50 = vadd.f32 1.0, %v6040_v36  ;;  %6061 = vpow2.f32 %v4203_v47  ;;  %v4206_v44 = vmul.f32 -1.442695, %v7964_v8  ;;  %v5701_v4 = vadd.f32 %v5363_v53, %v5043_v10 }
 0x21f   : > { %v3485_v60 = vpop.f32.mrb[25].mxu0  ;;  %v6044_v33 = vpop.eup %6043  ;;  %v3795_v61 = vmul.f32 %v6042_v13, %v7885_v59  ;;  %6063 = vrcp.f32 %v3706_v11  ;;  %v4205_v63 = vmul.f32 -1.442695, %v7968_v55 }
 0x220   : > { %v5702_v14 = vadd.f32 %v3485_v60, %v1954_v15  ;;  %v6046_v56 = vpop.eup %6045  ;;  %v3798_v27 = vmul.f32 %v6044_v33, %v7891_v40  ;;  %6065 = vrcp.f32 %v3705_v50  ;;  %v7976_v6 = vadd.f32 %v5701_v4, %v7847_v3  ;;  %v5046_v45 = vpop.f32.mrb[26].mxu1 }
 0x221   : > { %v6048_v32 = vpop.eup %6047  ;;  %3827 = vst [vmem:[%s7921_s5 + $0x40] sm:$0xff] %v3795_v61  ;;  %v3708_v7 = vadd.f32 1.0, %v6046_v56  ;;  %6067 = vpow2.f32 %v4206_v44  ;;  %v5366_v59 = vpop.f32.mrb[26].mxu0 }
 0x222   : > { %v7980_v23 = vadd.f32 %v5702_v14, %v7847_v3  ;;  %v1964_v58 = vpop.f32.mrb[27].mxu1  ;;  %v6050_v1 = vpop.eup %6049  ;;  %3830 = vst [vmem:[%s7921_s5 + $0x58] sm:$0xff] %v3798_v27  ;;  %v3707_v37 = vadd.f32 1.0, %v6048_v32  ;;  %6069 = vpow2.f32 %v4205_v63  ;;  %v4208_v40 = vmul.f32 -1.442695, %v7976_v6 }
 0x223   : > { %v5703_v26 = vadd.f32 %v5366_v59, %v5046_v45  ;;  %v3495_v46 = vpop.f32.mrb[27].mxu0  ;;  %v6052_v54 = vpop.eup %6051  ;;  %v3797_v20 = vmul.f32 %v6050_v1, %v7895_v49  ;;  %6071 = vrcp.f32 %v3708_v7 }
 0x224   : > { %v4207_v12 = vmul.f32 -1.442695, %v7980_v23  ;;  %v5704_v22 = vadd.f32 %v3495_v46, %v1964_v58  ;;  %v6054_v28 = vpop.eup %6053  ;;  %v3800_v25 = vmul.f32 %v6052_v54, %v7904_v57  ;;  %6073 = vrcp.f32 %v3707_v37  ;;  %v5049_v21 = vpop.f32.mrb[28].mxu1 }
 0x225   : > { %v7988_v41 = vadd.f32 %v5703_v26, %v7847_v3  ;;  %v6056_v24 = vpop.eup %6055  ;;  %3829 = vst [vmem:[%s7921_s5 + $0x50] sm:$0xff] %v3797_v20  ;;  %v3710_v5 = vadd.f32 1.0, %v6054_v28  ;;  %6075 = vpow2.f32 %v4208_v40  ;;  %v5369_v38 = vpop.f32.mrb[28].mxu0 }
 0x226   : > { %v7992_v49 = vadd.f32 %v5704_v22, %v7847_v3  ;;  %v1974_v39 = vpop.f32.mrb[29].mxu1  ;;  %v6058_v52 = vpop.eup %6057  ;;  %3832 = vst [vmem:[%s7921_s5 + $0x68] sm:$0xff] %v3800_v25  ;;  %v3799_v19 = vmul.f32 %v6056_v24, %v7907_v42  ;;  %6077 = vpow2.f32 %v4207_v12  ;;  %v5705_v30 = vadd.f32 %v5369_v38, %v5049_v21 }
 0x227   : > { %v4210_v57 = vmul.f32 -1.442695, %v7988_v41  ;;  %v3505_v2 = vpop.f32.mrb[29].mxu0  ;;  %v6060_v34 = vpop.eup %6059  ;;  %6079 = vrcp.f32 %v3710_v5  ;;  %v3709_v43 = vadd.f32 1.0, %v6058_v52 }
 0x228   : > { %v5706_v47 = vadd.f32 %v3505_v2, %v1974_v39  ;;  %v6062_v62 = vpop.eup %6061  ;;  %3831 = vst [vmem:[%s7921_s5 + $0x60] sm:$0xff] %v3799_v19  ;;  %v3712_v48 = vadd.f32 1.0, %v6060_v34  ;;  %v4209_v51 = vmul.f32 -1.442695, %v7992_v49  ;;  %v8000_v10 = vadd.f32 %v5705_v30, %v7847_v3  ;;  %v5052_v36 = vpop.f32.mrb[30].mxu1 }
 0x229   : > { %6081 = vpow2.f32 %v4210_v57  ;;  %v6064_v42 = vpop.eup %6063  ;;  %v3711_v11 = vadd.f32 1.0, %v6062_v62  ;;  %v5372_v15 = vpop.f32.mrb[30].mxu0 }
 0x22a   : > { %6083 = vrcp.f32 %v3709_v43  ;;  %v8003_v53 = vadd.f32 %v5706_v47, %v7847_v3  ;;  %v1984_v13 = vpop.f32.mrb[31].mxu1  ;;  %v6066_v50 = vpop.eup %6065  ;;  %v3802_v44 = vmul.f32 %v6064_v42, %v7915_v35  ;;  %v4212_v4 = vmul.f32 -1.442695, %v8000_v10 }
 0x22b   : > { %6085 = vrcp.f32 %v3712_v48  ;;  %v5707_v60 = vadd.f32 %v5372_v15, %v5052_v36  ;;  %v3515_v33 = vpop.f32.mrb[31].mxu0  ;;  %v6068_v61 = vpop.eup %6067  ;;  %v3801_v63 = vmul.f32 %v6066_v50, %v7919_v16 }
 0x22c   : > { %6087 = vrcp.f32 %v3711_v11  ;;  %v5708_v14 = vadd.f32 %v3515_v33, %v1984_v13  ;;  %v6070_v56 = vpop.eup %6069  ;;  %3834 = vst [vmem:[%s7921_s5 + $0x78] sm:$0xff] %v3802_v44  ;;  %v3714_v27 = vadd.f32 1.0, %v6068_v61  ;;  %v4211_v45 = vmul.f32 -1.442695, %v8003_v53 }
 0x22d   : > { %6089 = vpow2.f32 %v4209_v51  ;;  %v8011_v35 = vadd.f32 %v5707_v60, %v7847_v3  ;;  %v6072_v32 = vpop.eup %6071  ;;  %3833 = vst [vmem:[%s7921_s5 + $0x70] sm:$0xff] %v3801_v63  ;;  %v3713_v7 = vadd.f32 1.0, %v6070_v56 }
 0x22e   : > { %6091 = vpow2.f32 %v4212_v4  ;;  %v8015_v59 = vadd.f32 %v5708_v14, %v7847_v3  ;;  %v6074_v16 = vpop.eup %6073  ;;  %v3804_v58 = vmul.f32 %v6072_v32, %v7929_v9 }
 0x22f   : > { %6093 = vrcp.f32 %v3714_v27  ;;  %v4214_v1 = vmul.f32 -1.442695, %v8011_v35  ;;  %v6076_v37 = vpop.eup %6075  ;;  %v3803_v40 = vmul.f32 %v6074_v16, %v7933_v31 }
 0x230   : > { %6095 = vrcp.f32 %v3713_v7  ;;  %v6078_v26 = vpop.eup %6077  ;;  %3836 = vst [vmem:[%s7921_s5 + $0x88] sm:$0xff] %v3804_v58  ;;  %v3716_v46 = vadd.f32 1.0, %v6076_v37  ;;  %v4213_v54 = vmul.f32 -1.442695, %v8015_v59 }
 0x231   : > { %6097 = vpow2.f32 %v4211_v45  ;;  %v6080_v20 = vpop.eup %6079  ;;  %3835 = vst [vmem:[%s7921_s5 + $0x80] sm:$0xff] %v3803_v40  ;;  %v3715_v3 = vadd.f32 1.0, %v6078_v26 }
 0x232   : > { %6099 = vpow2.f32 %v4214_v1  ;;  %v3806_v12 = vmul.f32 %v6080_v20, %v7941_v29 }
 0x233   : > { %v6082_v9 = vpop.eup %6081  ;;  %6101 = vrcp.f32 %v3716_v46 }
 0x234   : > { %v6084_v22 = vpop.eup %6083  ;;  %6103 = vrcp.f32 %v3715_v3  ;;  %v3718_v31 = vadd.f32 1.0, %v6082_v9  ;;  %3838 = vst [vmem:[%s7921_s5 + $0x98] sm:$0xff] %v3806_v12 }
 0x235   : > { %v6086_v28 = vpop.eup %6085  ;;  %v3805_v25 = vmul.f32 %v6084_v22, %v7945_v0  ;;  %6105 = vpow2.f32 %v4213_v54 }
 0x236   : > { %v6088_v21 = vpop.eup %6087  ;;  %v3808_v24 = vmul.f32 %v6086_v28, %v7953_v18  ;;  %6107 = vrcp.f32 %v3718_v31 }
 0x237   : > { %v6090_v5 = vpop.eup %6089  ;;  %3837 = vst [vmem:[%s7921_s5 + $0x90] sm:$0xff] %v3805_v25  ;;  %v3807_v29 = vmul.f32 %v6088_v21, %v7956_v17 }
 0x238   : > { %v6092_v38 = vpop.eup %6091  ;;  %3840 = vst [vmem:[%s7921_s5 + $0xa8] sm:$0xff] %v3808_v24  ;;  %v3717_v39 = vadd.f32 1.0, %v6090_v5 }
 0x239   : > { %v6094_v52 = vpop.eup %6093  ;;  %3839 = vst [vmem:[%s7921_s5 + $0xa0] sm:$0xff] %v3807_v29  ;;  %v3720_v19 = vadd.f32 1.0, %v6092_v38 }
 0x23a   : > { %v6096_v57 = vpop.eup %6095  ;;  %v3810_v0 = vmul.f32 %v6094_v52, %v7964_v8  ;;  %6109 = vrcp.f32 %v3717_v39 }
 0x23b   : > { %v6098_v30 = vpop.eup %6097  ;;  %v3809_v18 = vmul.f32 %v6096_v57, %v7968_v55  ;;  %6111 = vrcp.f32 %v3720_v19 }
 0x23c   : > { %v6100_v2 = vpop.eup %6099  ;;  %3842 = vst [vmem:[%s7921_s5 + $0xb8] sm:$0xff] %v3810_v0  ;;  %v3719_v17 = vadd.f32 1.0, %v6098_v30 }
 0x23d   : > { %v6102_v34 = vpop.eup %6101  ;;  %3841 = vst [vmem:[%s7921_s5 + $0xb0] sm:$0xff] %v3809_v18  ;;  %v3722_v43 = vadd.f32 1.0, %v6100_v2 }
 0x23e   : > { %v6104_v47 = vpop.eup %6103  ;;  %v3812_v62 = vmul.f32 %v6102_v34, %v7976_v6  ;;  %6113 = vrcp.f32 %v3719_v17 }
 0x23f   : > { %v6106_v8 = vpop.eup %6105  ;;  %v3811_v48 = vmul.f32 %v6104_v47, %v7980_v23  ;;  %6115 = vrcp.f32 %v3722_v43 }
 0x240   : > { %v6108_v55 = vpop.eup %6107  ;;  %3844 = vst [vmem:[%s7921_s5 + $0xc8] sm:$0xff] %v3812_v62  ;;  %v3721_v51 = vadd.f32 1.0, %v6106_v8 }
 0x241   : > { %3843 = vst [vmem:[%s7921_s5 + $0xc0] sm:$0xff] %v3811_v48  ;;  %v3814_v36 = vmul.f32 %v6108_v55, %v7988_v41 }
 0x242   : > { %6117 = vrcp.f32 %v3721_v51 }
 0x243   : > { %3846 = vst [vmem:[%s7921_s5 + $0xd8] sm:$0xff] %v3814_v36 }
 0x244   : > { %v6110_v6 = vpop.eup %6109 }
 0x245   : > { %v6112_v42 = vpop.eup %6111  ;;  %v3813_v11 = vmul.f32 %v6110_v6, %v7992_v49 }
 0x246   : > { %v3816_v23 = vmul.f32 %v6112_v42, %v8000_v10 }
 0x247   : > { %3845 = vst [vmem:[%s7921_s5 + $0xd0] sm:$0xff] %v3813_v11 }
 0x248   : > { %v6114_v15 = vpop.eup %6113  ;;  %3848 = vst [vmem:[%s7921_s5 + $0xe8] sm:$0xff] %v3816_v23 }
 0x249   : > { %v6116_v13 = vpop.eup %6115  ;;  %v3815_v50 = vmul.f32 %v6114_v15, %v8003_v53 }
 0x24a   : > { %v3818_v41 = vmul.f32 %v6116_v13, %v8011_v35 }
 0x24b   : > { %3847 = vst [vmem:[%s7921_s5 + $0xe0] sm:$0xff] %v3815_v50 }
 0x24c   : > { %v6118_v44 = vpop.eup %6117  ;;  %3850 = vst [vmem:[%s7921_s5 + $0xf8] sm:$0xff] %v3818_v41 }
 0x24d   : > { %v3817_v49 = vmul.f32 %v6118_v44, %v8015_v59 }
 0x24f   : > { %3849 = vst [vmem:[%s7921_s5 + $0xf0] sm:$0xff] %v3817_v49 }
 0x250   : > { %6177 = shalt.err (!%p6174_p5)
}
 0x251   : > { %s6178_s23 = scalar_lea.hbm %s8054_s10, 4096  ;;  %s6182_s28 = scalar_lea.hbm %s8111_s3, 8192 }
 0x252   : > { %p6179_p6 = scmp.ne.s32.totalorder %s8054_s10, %s6178_s23  ;;  %p6183_p10 = scmp.lt.u32.totalorder %s8054_s10, %s8111_s3 }
 0x253   : > { %p6184_p11 = scmp.lt.u32.totalorder %s6182_s28, %s6178_s23  ;;  %p6186_p13 = scmp.lt.u32.totalorder %s6178_s23, %s8054_s10 }
 0x254   : > { %p6180_p7 = pnand %p6179_p6, %p6307_p4 }
 0x255   : > { %p6185_p12 = por %p6184_p11, %p6183_p10 }
 0x256   : > { %p6181_p9 = pneg %p6180_p7 }
 0x257   : > { %p6187_p0 = por %p6186_p13, %p6185_p12 }
 0x259   : > { %p6188_p1 = pnand %p6187_p0, %p6181_p9 }
 0x25b   : > { %6191 = shalt.err (!%p6188_p1)
}
 0x25c   : > { %s6245_s4 = smov 128   ;;  %s6246_s5 = smov 8  }
 0x25d   : > { %5934 = dma.vmem_to_hbm [thread:$0]  (%p6307_p4), %s8056_s7, 4096, %s8054_s10, %s8062_s15, %s6245_s4, %s6245_s4, %s6246_s5  }
 0x25e PF: > { %p5940_p2 = scmp.ge.s32.totalorder %s6242_s17, 2  ;;  %s3883_s6 = sand.u32 1, %s6222_s12  }
 0x25f   : > { %s3884_s8 = scalar_lea.sflag [#allocation3], %s3883_s6 }
 0x260   : > { %p5937_p3 = pnand %p5940_p2, %p6314_p8 }
 0x262   : > { %6217 = dma.done.wait (!%p5937_p3), %s3884_s8, 4096  }
 0x263   : > { %6219 = vsyncadd (!%p5937_p3), %s3884_s8, 4294963200  ;;  %s16_s17 = sadd.s32 1, %s6242_s17   ;;  %s8298_s12 = smov %s6226_s13 }
 0x264   : > { %p13_p5 = scmp.ge.s32.totalorder %s16_s17, 4   ;;  %s8299_s13 = smov %s6230_s14 }
 0x265   : > { %s8300_s14 = smov %s6320_s25  ;;  %s8301_s15 = smov %s6238_s16 }
 0x266   : > { %s8302_s16 = smov %s8304_s20  ;;  %15 = sbr.rel (!%p13_p5) target bundleno = 4 (0x4), region = 78 }
 0x26d   :  { %3889 = vsyncpa [#allocation3], 1 }
 0x26e   :  { %3891 = vsyncpa [#allocation3 + $0x1], 1 }

</bundles_post_ra>
